<compile_context>
chip_gen: v5e
topology: v5e:2x2
jax: 0.10.0
libtpu: 0.0.40
codegen_flags: <defaults>
</compile_context>

<pallas_src>
import jax
import jax.numpy as jnp
from jax import lax
from jax.experimental import pallas as pl
from jax.experimental.pallas import tpu as pltpu


def lstmatt_kernel(x_ref, mask_ref,
                   wih_ref, whh_ref, bias_ref,
                   inw_ref, inb_ref, outw_ref, outb_ref,
                   o_ref,
                   xproj_ref, h_all_ref, hbrev_ref):
    S, B, In2 = x_ref.shape
    H = hbrev_ref.shape[2]
    E = 2 * H
    G = 2 * H          # width of one fused gate block (fwd H + bwd H)

    # ---- phase 1: hoisted, PRE-BLENDED input projection for BOTH directions ----
    # x_ref[t] = concat(x[t], x[S-1-t]); wih is packed so the top In rows feed the
    # fwd gate columns and the bottom In rows feed the bwd gate columns, hence
    # xproj_ref[t] is already the correct per-step operand for both directions.
    x_flat = x_ref[...].reshape(S * B, In2)
    xproj = jnp.dot(x_flat, wih_ref[...],
                    preferred_element_type=jnp.float32) + bias_ref[...]
    xproj_ref[...] = xproj.reshape(S, B, 8 * H)

    # ---- phase 2: fused fwd/bwd recurrence (single serial chain) ----------------
    whh = whh_ref[...]        # (2H, 8H) block-diagonal; fine while 2H <= 128
    # TODO(synk): for H > 64 split whh into two (H, 4H) matmuls (block-diag wastes
    # MXU K-passes); for very latency-bound cases consider pltpu.matmul_push_rhs
    # to hold whh in MXU weight registers across all S steps.

    def step(t, carry):
        h_all, c_all = carry                              # (B, 2H): [fwd | bwd]
        gates = jnp.dot(h_all, whh,
                        preferred_element_type=jnp.float32) + xproj_ref[t]
        i_g = jax.nn.sigmoid(gates[:, 0 * G:1 * G])       # PyTorch order: i, f, g, o
        f_g = jax.nn.sigmoid(gates[:, 1 * G:2 * G])
        g_g = jnp.tanh(gates[:, 2 * G:3 * G])
        o_g = jax.nn.sigmoid(gates[:, 3 * G:4 * G])
        c_new = f_g * c_all + i_g * g_g
        h_new = o_g * jnp.tanh(c_new)
        h_all_ref[t] = h_new      # single unsliced store: [h_f(t) | h_b(S-1-t)]
        return (h_new, c_new)

    init = (jnp.zeros((B, E), jnp.float32), jnp.zeros((B, E), jnp.float32))
    lax.fori_loop(0, S, step, init, unroll=min(S, 8))

    # TODO(synk): nn.Dropout / attention dropout treated as eval-mode identity.

    # ---- phase 3: single-head self-attention + mean pool ------------------------
    # 3a. un-reverse the bwd hidden states ONCE (off the serial chain).
    @pl.loop(0, S)
    def _(t):
        hbrev_ref[t] = h_all_ref[S - 1 - t][:, H:]

    hf_flat = h_all_ref[...][:, :, :H].reshape(S * B, H)     # fwd hidden, time t
    hb_flat = hbrev_ref[...].reshape(S * B, H)               # bwd hidden, time t

    # 3b. QKV projection (1/sqrt(E) already folded into the Q columns of inw).
    inw = inw_ref[...]                                        # (2H, 3E) pre-transposed
    qkv = (jnp.dot(hf_flat, inw[:H, :], preferred_element_type=jnp.float32)
           + jnp.dot(hb_flat, inw[H:, :], preferred_element_type=jnp.float32)
           + inb_ref[...])                                    # (S*B, 3E)
    # seq-major -> batch-major once (no Python slice/stack loop).
    qkv_bse = pltpu.einshape("sbe->bse", qkv.reshape(S, B, 3 * E))   # (B, S, 3E)
    q = qkv_bse[..., 0:E]
    k = qkv_bse[..., E:2 * E]
    v = qkv_bse[..., 2 * E:3 * E]

    # 3c. scores + masked softmax (exact divide); mean pool folded into the value
    #     contraction: pooled = sum_k (mean_q attn[q, k]) * v[k]  (ctx never built).
    scores = jnp.einsum('bqe,bke->bqk', q, k,
                        preferred_element_type=jnp.float32)          # (B, S, S)
    key_bias = jnp.where(mask_ref[...] > 0.5, -1e30, 0.0)            # (B, S)
    scores = scores + key_bias[:, None, :]
    # TODO(synk): for large S tile this over key blocks (online softmax) — scores
    # is the first VMEM blow-up as S grows.
    m = jnp.max(scores, axis=-1, keepdims=True)
    p = jnp.exp(scores - m)
    attn = p / jnp.sum(p, axis=-1, keepdims=True)                    # exact divide
    w = jnp.mean(attn, axis=1, keepdims=True)                        # (B, 1, S)
    pooled = jnp.einsum('bqk,bke->bqe', w, v,
                        preferred_element_type=jnp.float32)[:, 0, :] # (B, E)

    # AdaptiveAvgPool1d(1) over seq; affine out-proj commutes with the mean.
    o_ref[...] = (jnp.dot(pooled, outw_ref[...],
                          preferred_element_type=jnp.float32) + outb_ref[...])


def _round_up(a, m):
    return ((a + m - 1) // m) * m


def _vmem_estimate(bt, S, In, H):
    """Rough per-tile VMEM footprint (bytes) used for tile-size selection."""
    E = 2 * H
    b = 0
    b += 2 * S * bt * (2 * In) * 4        # blended x block (double-buffered)
    b += S * bt * 8 * H * 4               # xproj scratch
    b += S * bt * 2 * H * 4               # h_all scratch
    b += S * bt * H * 4                   # hb_rev scratch
    b += 3 * S * bt * 3 * E * 4           # qkv + batch-major copy + q/k/v views
    b += 3 * bt * S * S * 4               # scores / exp / attn
    b += 4 * bt * S * 4                   # mask block + key bias + pool weights
    return b


def _pick_b_tile(B, S, In, H, vmem_budget=40 * 1024 * 1024):
    """Fill the MXU M-dim (<=128 rows, multiple of 8), keep the per-tile VMEM
    footprint v7x-safe, and keep >= 2 batch tiles when the batch is big enough
    to feed v7x's 2 TensorCores."""
    bt = min(128, _round_up(B, 8))
    if B >= 16:                                   # prefer >= 2 grid steps
        bt = min(bt, _round_up((B + 1) // 2, 8))
    while bt > 8 and _vmem_estimate(bt, S, In, H) > vmem_budget:
        bt -= 8
    return bt


def _pack_lstm(wih_f, whh_f, bf, wih_b, whh_b, bb):
    """Pack PyTorch-layout LSTM weights into the kernel's fused layout.

    Column layout (8H wide): [i_f,i_b, f_f,f_b, g_f,g_b, o_f,o_b], each H.
    wih is (2*In, 8H): top In rows feed the fwd columns (from x[t]) and bottom In
    rows feed the bwd columns (from x[S-1-t]), matching the wrapper's blended input.
    whh is a (2H, 8H) block-diagonal so one MXU pass per recurrent step produces
    the gates of BOTH directions from h_all = [h_f | h_b].
    """
    H = whh_f.shape[1]
    In = wih_f.shape[1]

    def interleave(a_f, a_b):                 # (R,4H),(R,4H) -> (R,8H)
        R = a_f.shape[0]
        return jnp.stack([a_f.reshape(R, 4, H), a_b.reshape(R, 4, H)],
                         axis=2).reshape(R, 8 * H)

    zi = jnp.zeros((In, 4 * H), jnp.float32)
    wih_big = jnp.concatenate([interleave(wih_f.T, zi),
                               interleave(zi, wih_b.T)], axis=0)         # (2In, 8H)
    bias_all = interleave(bf, bb)                                        # (1, 8H)
    zh = jnp.zeros((H, 4 * H), jnp.float32)
    whh_blk = interleave(jnp.concatenate([whh_f.T, zh], axis=0),
                         jnp.concatenate([zh, whh_b.T], axis=0))         # (2H, 8H)
    return wih_big, whh_blk, bias_all


def lstmatt_forward(features, mask, params):
    """features: (B, S, In) f32; mask: (B, S) bool/float, True/1 == padded key."""
    B, S, In = features.shape
    H = params["whh_f"].shape[1]
    E = 2 * H

    B_TILE = _pick_b_tile(B, S, In, H)
    B_pad = _round_up(B, B_TILE)

    x = jnp.transpose(features, (1, 0, 2)).astype(jnp.float32)           # (S, B, In)
    # Pre-blend source for the fused recurrence: row t carries x[t] (fwd) and
    # x[S-1-t] (bwd); the time flip is free XLA work in the wrapper.
    xx = jnp.concatenate([x, x[::-1]], axis=-1)                          # (S, B, 2In)
    mask_f = mask.astype(jnp.float32)
    if B_pad != B:
        xx = jnp.pad(xx, ((0, 0), (0, B_pad - B), (0, 0)))
        mask_f = jnp.pad(mask_f, ((0, B_pad - B), (0, 0)))   # pad rows: no masked keys

    wih_all, whh_blk, bias_all = _pack_lstm(
        params["wih_f"], params["whh_f"], params["bf"],
        params["wih_b"], params["whh_b"], params["bb"])

    # Fold the 1/sqrt(E) attention scale into the Q projection (weights + bias).
    scale = float(E) ** -0.5
    in_w_t = params["in_w"].T                                            # (E, 3E)
    in_w_t = jnp.concatenate([in_w_t[:, :E] * scale, in_w_t[:, E:]], axis=1)
    in_b = jnp.concatenate([params["in_b"][:, :E] * scale,
                            params["in_b"][:, E:]], axis=1)              # (1, 3E)
    out_w_t = params["out_w"].T                                          # (E, E)

    args = (xx, mask_f, wih_all, whh_blk, bias_all,
            in_w_t, in_b, out_w_t, params["out_b"])

    def replicated(a):
        return pl.BlockSpec(a.shape, lambda i, nd=a.ndim: (0,) * nd)

    vmem_limit = int(min(60 * 1024 * 1024,
                         max(32 * 1024 * 1024,
                             2 * _vmem_estimate(B_TILE, S, In, H))))

    out = pl.pallas_call(
        lstmatt_kernel,
        out_shape=jax.ShapeDtypeStruct((B_pad, E), jnp.float32),
        grid=(B_pad // B_TILE,),
        in_specs=[
            pl.BlockSpec((S, B_TILE, 2 * In), lambda i: (0, i, 0)),      # blended x
            pl.BlockSpec((B_TILE, S), lambda i: (i, 0)),                 # key_padding_mask
            replicated(wih_all), replicated(whh_blk), replicated(bias_all),
            replicated(in_w_t), replicated(in_b),
            replicated(out_w_t), replicated(params["out_b"]),
        ],
        out_specs=pl.BlockSpec((B_TILE, E), lambda i: (i, 0)),
        scratch_shapes=[
            pltpu.VMEM((S, B_TILE, 8 * H), jnp.float32),   # pre-blended input projections
            pltpu.VMEM((S, B_TILE, 2 * H), jnp.float32),   # [h_f(t) | h_b(S-1-t)]
            pltpu.VMEM((S, B_TILE, H), jnp.float32),       # bwd hidden, natural time order
        ],
        compiler_params=pltpu.CompilerParams(
            dimension_semantics=("parallel",),
            vmem_limit_bytes=vmem_limit),
    )(*args)
    return out[:B]


def init_params(key, in_features, hidden):
    E = 2 * hidden
    ks = jax.random.split(key, 10)
    s = 0.1

    def rnd(k, shape):
        return jax.random.normal(k, shape, jnp.float32) * s

    return dict(
        # nn.LSTM(in_features, hidden, bidirectional=True);
        # NOTE: biases are pre-summed (b_ih + b_hh) as the kernel expects.
        wih_f=rnd(ks[0], (4 * hidden, in_features)),
        whh_f=rnd(ks[1], (4 * hidden, hidden)),
        bf=rnd(ks[2], (1, 4 * hidden)),
        wih_b=rnd(ks[3], (4 * hidden, in_features)),
        whh_b=rnd(ks[4], (4 * hidden, hidden)),
        bb=rnd(ks[5], (1, 4 * hidden)),
        # nn.MultiheadAttention(embed_dim=2H, num_heads=1)
        in_w=rnd(ks[6], (3 * E, E)),
        in_b=rnd(ks[7], (1, 3 * E)),
        out_w=rnd(ks[8], (E, E)),
        out_b=rnd(ks[9], (1, E)),
    )


if __name__ == "__main__":
    B, S, In, H = 2, 8, 16, 32
    key = jax.random.PRNGKey(0)
    kx, kp = jax.random.split(key)

    features = jax.random.normal(kx, (B, S, In), jnp.float32)
    lengths = jnp.array([S, 5])
    # key_padding_mask: True == padded position (ignored by attention)
    mask = jnp.arange(S)[None, :] >= lengths[:, None]

    params = init_params(kp, In, H)
    out = lstmatt_forward(features, mask, params)
    out = jax.block_until_ready(out)
    assert out.shape == (B, 2 * H), out.shape
    assert bool(jnp.all(jnp.isfinite(out)))
    print("KERNEL_OK")
</pallas_src>

<mosaic_0001>
module attributes {stable_mosaic.version = 11 : i64} {
  func.func @lstmatt_kernel(%arg0: i32, %arg1: memref<8x8x32xf32, #tpu.memory_space<vmem>>, %arg2: memref<8x8xf32, #tpu.memory_space<vmem>>, %arg3: memref<32x256xf32, #tpu.memory_space<vmem>>, %arg4: memref<64x256xf32, #tpu.memory_space<vmem>>, %arg5: memref<1x256xf32, #tpu.memory_space<vmem>>, %arg6: memref<64x192xf32, #tpu.memory_space<vmem>>, %arg7: memref<1x192xf32, #tpu.memory_space<vmem>>, %arg8: memref<64x64xf32, #tpu.memory_space<vmem>>, %arg9: memref<1x64xf32, #tpu.memory_space<vmem>>, %arg10: memref<8x64xf32, #tpu.memory_space<vmem>>, %arg11: memref<8x8x256xf32, #tpu.memory_space<vmem>>, %arg12: memref<8x8x64xf32, #tpu.memory_space<vmem>>, %arg13: memref<8x8x32xf32, #tpu.memory_space<vmem>>) attributes {dimension_semantics = [#tpu.dimension_semantics<parallel>], iteration_bounds = array<i64: 1>, scalar_prefetch = 0 : i64, scratch_operands = 3 : i64, tpu.core_type = #tpu.core_type<tc>, window_params = [{transform_indices = @transform_0, window_bounds = array<i64: 8, 8, 32>}, {transform_indices = @transform_1, window_bounds = array<i64: 8, 8>}, {pipeline_mode = #tpu.pipeline_mode<synchronous>, transform_indices = @transform_2, window_bounds = array<i64: 32, 256>}, {pipeline_mode = #tpu.pipeline_mode<synchronous>, transform_indices = @transform_3, window_bounds = array<i64: 64, 256>}, {pipeline_mode = #tpu.pipeline_mode<synchronous>, transform_indices = @transform_4, window_bounds = array<i64: 1, 256>}, {pipeline_mode = #tpu.pipeline_mode<synchronous>, transform_indices = @transform_5, window_bounds = array<i64: 64, 192>}, {pipeline_mode = #tpu.pipeline_mode<synchronous>, transform_indices = @transform_6, window_bounds = array<i64: 1, 192>}, {pipeline_mode = #tpu.pipeline_mode<synchronous>, transform_indices = @transform_7, window_bounds = array<i64: 64, 64>}, {pipeline_mode = #tpu.pipeline_mode<synchronous>, transform_indices = @transform_8, window_bounds = array<i64: 1, 64>}, {transform_indices = @transform_9, window_bounds = array<i64: 8, 64>}]} {
    %c0 = arith.constant 0 : index
    %c0_0 = arith.constant 0 : index
    %c0_1 = arith.constant 0 : index
    %0 = vector.load %arg1[%c0, %c0_0, %c0_1] : memref<8x8x32xf32, #tpu.memory_space<vmem>>, vector<8x8x32xf32>
    %1 = vector.shape_cast %0 : vector<8x8x32xf32> to vector<64x32xf32>
    %c0_2 = arith.constant 0 : index
    %c0_3 = arith.constant 0 : index
    %2 = vector.load %arg3[%c0_2, %c0_3] : memref<32x256xf32, #tpu.memory_space<vmem>>, vector<32x256xf32>
    %cst = arith.constant dense<0.000000e+00> : vector<64x256xf32>
    %3 = tpu.matmul %1, %2, %cst {dimension_numbers = #tpu.dot_dimension_numbers<[1], [0], [0], [1], [0, 0, 1, 1], [], []>} : vector<64x32xf32>, vector<32x256xf32>, vector<64x256xf32> -> vector<64x256xf32>
    %c0_4 = arith.constant 0 : index
    %c0_5 = arith.constant 0 : index
    %4 = vector.load %arg5[%c0_4, %c0_5] : memref<1x256xf32, #tpu.memory_space<vmem>>, vector<1x256xf32>
    %5 = vector.broadcast %4 : vector<1x256xf32> to vector<64x256xf32>
    %6 = arith.addf %3, %5 : vector<64x256xf32>
    %7 = vector.shape_cast %6 : vector<64x256xf32> to vector<8x8x256xf32>
    %c0_6 = arith.constant 0 : index
    %c0_7 = arith.constant 0 : index
    %c0_8 = arith.constant 0 : index
    %8 = vector.load %arg11[%c0_6, %c0_7, %c0_8] : memref<8x8x256xf32, #tpu.memory_space<vmem>>, vector<8x8x256xf32>
    tpu.vector_store %arg11[%c0_6, %c0_7, %c0_8], %7 {strides = array<i32>} : memref<8x8x256xf32, #tpu.memory_space<vmem>>, vector<8x8x256xf32>,
    %c0_9 = arith.constant 0 : index
    %c0_10 = arith.constant 0 : index
    %9 = vector.load %arg4[%c0_9, %c0_10] : memref<64x256xf32, #tpu.memory_space<vmem>>, vector<64x256xf32>
    %cst_11 = arith.constant 0.000000e+00 : f32
    %10 = vector.broadcast %cst_11 : f32 to vector<8x64xf32>
    %cst_12 = arith.constant 0.000000e+00 : f32
    %11 = vector.broadcast %cst_12 : f32 to vector<8x64xf32>
    %c0_i32 = arith.constant 0 : i32
    %cst_13 = arith.constant dense<0.000000e+00> : vector<8x256xf32>
    %12 = tpu.matmul %10, %9, %cst_13 {dimension_numbers = #tpu.dot_dimension_numbers<[1], [0], [0], [1], [0, 0, 1, 1], [], []>} : vector<8x64xf32>, vector<64x256xf32>, vector<8x256xf32> -> vector<8x256xf32>
    %13 = arith.index_cast %c0_i32 : i32 to index
    %c0_14 = arith.constant 0 : index
    %c0_15 = arith.constant 0 : index
    %14 = vector.load %arg11[%13, %c0_14, %c0_15] : memref<8x8x256xf32, #tpu.memory_space<vmem>>, vector<1x8x256xf32>
    %15 = vector.shape_cast %14 : vector<1x8x256xf32> to vector<8x256xf32>
    %16 = arith.addf %12, %15 : vector<8x256xf32>
    %17 = vector.extract_strided_slice %16 {offsets = [0, 0], sizes = [8, 64], strides = [1, 1]} : vector<8x256xf32> to vector<8x64xf32>
    %18 = arith.negf %17 : vector<8x64xf32>
    %19 = math.exp %18 : vector<8x64xf32>
    %cst_16 = arith.constant 1.000000e+00 : f32
    %20 = vector.broadcast %cst_16 : f32 to vector<8x64xf32>
    %21 = arith.addf %20, %19 : vector<8x64xf32>
    %22 = arith.divf %20, %21 : vector<8x64xf32>
    %23 = vector.extract_strided_slice %16 {offsets = [0, 64], sizes = [8, 64], strides = [1, 1]} : vector<8x256xf32> to vector<8x64xf32>
    %24 = arith.negf %23 : vector<8x64xf32>
    %25 = math.exp %24 : vector<8x64xf32>
    %cst_17 = arith.constant 1.000000e+00 : f32
    %26 = vector.broadcast %cst_17 : f32 to vector<8x64xf32>
    %27 = arith.addf %26, %25 : vector<8x64xf32>
    %28 = arith.divf %26, %27 : vector<8x64xf32>
    %29 = vector.extract_strided_slice %16 {offsets = [0, 128], sizes = [8, 64], strides = [1, 1]} : vector<8x256xf32> to vector<8x64xf32>
    %30 = math.tanh %29 : vector<8x64xf32>
    %31 = vector.extract_strided_slice %16 {offsets = [0, 192], sizes = [8, 64], strides = [1, 1]} : vector<8x256xf32> to vector<8x64xf32>
    %32 = arith.negf %31 : vector<8x64xf32>
    %33 = math.exp %32 : vector<8x64xf32>
    %cst_18 = arith.constant 1.000000e+00 : f32
    %34 = vector.broadcast %cst_18 : f32 to vector<8x64xf32>
    %35 = arith.addf %34, %33 : vector<8x64xf32>
    %36 = arith.divf %34, %35 : vector<8x64xf32>
    %37 = arith.mulf %28, %11 : vector<8x64xf32>
    %38 = arith.mulf %22, %30 : vector<8x64xf32>
    %39 = arith.addf %37, %38 : vector<8x64xf32>
    %40 = math.tanh %39 : vector<8x64xf32>
    %41 = arith.mulf %36, %40 : vector<8x64xf32>
    %42 = arith.index_cast %c0_i32 : i32 to index
    %c0_19 = arith.constant 0 : index
    %c0_20 = arith.constant 0 : index
    %43 = vector.load %arg12[%42, %c0_19, %c0_20] : memref<8x8x64xf32, #tpu.memory_space<vmem>>, vector<1x8x64xf32>
    %44 = vector.shape_cast %43 : vector<1x8x64xf32> to vector<8x64xf32>
    %45 = vector.shape_cast %41 : vector<8x64xf32> to vector<1x8x64xf32>
    tpu.vector_store %arg12[%42, %c0_19, %c0_20], %45 {strides = array<i32>} : memref<8x8x64xf32, #tpu.memory_space<vmem>>, vector<1x8x64xf32>,
    %c1_i32 = arith.constant 1 : i32
    %cst_21 = arith.constant dense<0.000000e+00> : vector<8x256xf32>
    %46 = tpu.matmul %41, %9, %cst_21 {dimension_numbers = #tpu.dot_dimension_numbers<[1], [0], [0], [1], [0, 0, 1, 1], [], []>} : vector<8x64xf32>, vector<64x256xf32>, vector<8x256xf32> -> vector<8x256xf32>
    %47 = arith.index_cast %c1_i32 : i32 to index
    %c0_22 = arith.constant 0 : index
    %c0_23 = arith.constant 0 : index
    %48 = vector.load %arg11[%47, %c0_22, %c0_23] : memref<8x8x256xf32, #tpu.memory_space<vmem>>, vector<1x8x256xf32>
    %49 = vector.shape_cast %48 : vector<1x8x256xf32> to vector<8x256xf32>
    %50 = arith.addf %46, %49 : vector<8x256xf32>
    %51 = vector.extract_strided_slice %50 {offsets = [0, 0], sizes = [8, 64], strides = [1, 1]} : vector<8x256xf32> to vector<8x64xf32>
    %52 = arith.negf %51 : vector<8x64xf32>
    %53 = math.exp %52 : vector<8x64xf32>
    %cst_24 = arith.constant 1.000000e+00 : f32
    %54 = vector.broadcast %cst_24 : f32 to vector<8x64xf32>
    %55 = arith.addf %54, %53 : vector<8x64xf32>
    %56 = arith.divf %54, %55 : vector<8x64xf32>
    %57 = vector.extract_strided_slice %50 {offsets = [0, 64], sizes = [8, 64], strides = [1, 1]} : vector<8x256xf32> to vector<8x64xf32>
    %58 = arith.negf %57 : vector<8x64xf32>
    %59 = math.exp %58 : vector<8x64xf32>
    %cst_25 = arith.constant 1.000000e+00 : f32
    %60 = vector.broadcast %cst_25 : f32 to vector<8x64xf32>
    %61 = arith.addf %60, %59 : vector<8x64xf32>
    %62 = arith.divf %60, %61 : vector<8x64xf32>
    %63 = vector.extract_strided_slice %50 {offsets = [0, 128], sizes = [8, 64], strides = [1, 1]} : vector<8x256xf32> to vector<8x64xf32>
    %64 = math.tanh %63 : vector<8x64xf32>
    %65 = vector.extract_strided_slice %50 {offsets = [0, 192], sizes = [8, 64], strides = [1, 1]} : vector<8x256xf32> to vector<8x64xf32>
    %66 = arith.negf %65 : vector<8x64xf32>
    %67 = math.exp %66 : vector<8x64xf32>
    %cst_26 = arith.constant 1.000000e+00 : f32
    %68 = vector.broadcast %cst_26 : f32 to vector<8x64xf32>
    %69 = arith.addf %68, %67 : vector<8x64xf32>
    %70 = arith.divf %68, %69 : vector<8x64xf32>
    %71 = arith.mulf %62, %39 : vector<8x64xf32>
    %72 = arith.mulf %56, %64 : vector<8x64xf32>
    %73 = arith.addf %71, %72 : vector<8x64xf32>
    %74 = math.tanh %73 : vector<8x64xf32>
    %75 = arith.mulf %70, %74 : vector<8x64xf32>
    %76 = arith.index_cast %c1_i32 : i32 to index
    %c0_27 = arith.constant 0 : index
    %c0_28 = arith.constant 0 : index
    %77 = vector.load %arg12[%76, %c0_27, %c0_28] : memref<8x8x64xf32, #tpu.memory_space<vmem>>, vector<1x8x64xf32>
    %78 = vector.shape_cast %77 : vector<1x8x64xf32> to vector<8x64xf32>
    %79 = vector.shape_cast %75 : vector<8x64xf32> to vector<1x8x64xf32>
    tpu.vector_store %arg12[%76, %c0_27, %c0_28], %79 {strides = array<i32>} : memref<8x8x64xf32, #tpu.memory_space<vmem>>, vector<1x8x64xf32>,
    %c2_i32 = arith.constant 2 : i32
    %cst_29 = arith.constant dense<0.000000e+00> : vector<8x256xf32>
    %80 = tpu.matmul %75, %9, %cst_29 {dimension_numbers = #tpu.dot_dimension_numbers<[1], [0], [0], [1], [0, 0, 1, 1], [], []>} : vector<8x64xf32>, vector<64x256xf32>, vector<8x256xf32> -> vector<8x256xf32>
    %81 = arith.index_cast %c2_i32 : i32 to index
    %c0_30 = arith.constant 0 : index
    %c0_31 = arith.constant 0 : index
    %82 = vector.load %arg11[%81, %c0_30, %c0_31] : memref<8x8x256xf32, #tpu.memory_space<vmem>>, vector<1x8x256xf32>
    %83 = vector.shape_cast %82 : vector<1x8x256xf32> to vector<8x256xf32>
    %84 = arith.addf %80, %83 : vector<8x256xf32>
    %85 = vector.extract_strided_slice %84 {offsets = [0, 0], sizes = [8, 64], strides = [1, 1]} : vector<8x256xf32> to vector<8x64xf32>
    %86 = arith.negf %85 : vector<8x64xf32>
    %87 = math.exp %86 : vector<8x64xf32>
    %cst_32 = arith.constant 1.000000e+00 : f32
    %88 = vector.broadcast %cst_32 : f32 to vector<8x64xf32>
    %89 = arith.addf %88, %87 : vector<8x64xf32>
    %90 = arith.divf %88, %89 : vector<8x64xf32>
    %91 = vector.extract_strided_slice %84 {offsets = [0, 64], sizes = [8, 64], strides = [1, 1]} : vector<8x256xf32> to vector<8x64xf32>
    %92 = arith.negf %91 : vector<8x64xf32>
    %93 = math.exp %92 : vector<8x64xf32>
    %cst_33 = arith.constant 1.000000e+00 : f32
    %94 = vector.broadcast %cst_33 : f32 to vector<8x64xf32>
    %95 = arith.addf %94, %93 : vector<8x64xf32>
    %96 = arith.divf %94, %95 : vector<8x64xf32>
    %97 = vector.extract_strided_slice %84 {offsets = [0, 128], sizes = [8, 64], strides = [1, 1]} : vector<8x256xf32> to vector<8x64xf32>
    %98 = math.tanh %97 : vector<8x64xf32>
    %99 = vector.extract_strided_slice %84 {offsets = [0, 192], sizes = [8, 64], strides = [1, 1]} : vector<8x256xf32> to vector<8x64xf32>
    %100 = arith.negf %99 : vector<8x64xf32>
    %101 = math.exp %100 : vector<8x64xf32>
    %cst_34 = arith.constant 1.000000e+00 : f32
    %102 = vector.broadcast %cst_34 : f32 to vector<8x64xf32>
    %103 = arith.addf %102, %101 : vector<8x64xf32>
    %104 = arith.divf %102, %103 : vector<8x64xf32>
    %105 = arith.mulf %96, %73 : vector<8x64xf32>
    %106 = arith.mulf %90, %98 : vector<8x64xf32>
    %107 = arith.addf %105, %106 : vector<8x64xf32>
    %108 = math.tanh %107 : vector<8x64xf32>
    %109 = arith.mulf %104, %108 : vector<8x64xf32>
    %110 = arith.index_cast %c2_i32 : i32 to index
    %c0_35 = arith.constant 0 : index
    %c0_36 = arith.constant 0 : index
    %111 = vector.load %arg12[%110, %c0_35, %c0_36] : memref<8x8x64xf32, #tpu.memory_space<vmem>>, vector<1x8x64xf32>
    %112 = vector.shape_cast %111 : vector<1x8x64xf32> to vector<8x64xf32>
    %113 = vector.shape_cast %109 : vector<8x64xf32> to vector<1x8x64xf32>
    tpu.vector_store %arg12[%110, %c0_35, %c0_36], %113 {strides = array<i32>} : memref<8x8x64xf32, #tpu.memory_space<vmem>>, vector<1x8x64xf32>,
    %c3_i32 = arith.constant 3 : i32
    %cst_37 = arith.constant dense<0.000000e+00> : vector<8x256xf32>
    %114 = tpu.matmul %109, %9, %cst_37 {dimension_numbers = #tpu.dot_dimension_numbers<[1], [0], [0], [1], [0, 0, 1, 1], [], []>} : vector<8x64xf32>, vector<64x256xf32>, vector<8x256xf32> -> vector<8x256xf32>
    %115 = arith.index_cast %c3_i32 : i32 to index
    %c0_38 = arith.constant 0 : index
    %c0_39 = arith.constant 0 : index
    %116 = vector.load %arg11[%115, %c0_38, %c0_39] : memref<8x8x256xf32, #tpu.memory_space<vmem>>, vector<1x8x256xf32>
    %117 = vector.shape_cast %116 : vector<1x8x256xf32> to vector<8x256xf32>
    %118 = arith.addf %114, %117 : vector<8x256xf32>
    %119 = vector.extract_strided_slice %118 {offsets = [0, 0], sizes = [8, 64], strides = [1, 1]} : vector<8x256xf32> to vector<8x64xf32>
    %120 = arith.negf %119 : vector<8x64xf32>
    %121 = math.exp %120 : vector<8x64xf32>
    %cst_40 = arith.constant 1.000000e+00 : f32
    %122 = vector.broadcast %cst_40 : f32 to vector<8x64xf32>
    %123 = arith.addf %122, %121 : vector<8x64xf32>
    %124 = arith.divf %122, %123 : vector<8x64xf32>
    %125 = vector.extract_strided_slice %118 {offsets = [0, 64], sizes = [8, 64], strides = [1, 1]} : vector<8x256xf32> to vector<8x64xf32>
    %126 = arith.negf %125 : vector<8x64xf32>
    %127 = math.exp %126 : vector<8x64xf32>
    %cst_41 = arith.constant 1.000000e+00 : f32
    %128 = vector.broadcast %cst_41 : f32 to vector<8x64xf32>
    %129 = arith.addf %128, %127 : vector<8x64xf32>
    %130 = arith.divf %128, %129 : vector<8x64xf32>
    %131 = vector.extract_strided_slice %118 {offsets = [0, 128], sizes = [8, 64], strides = [1, 1]} : vector<8x256xf32> to vector<8x64xf32>
    %132 = math.tanh %131 : vector<8x64xf32>
    %133 = vector.extract_strided_slice %118 {offsets = [0, 192], sizes = [8, 64], strides = [1, 1]} : vector<8x256xf32> to vector<8x64xf32>
    %134 = arith.negf %133 : vector<8x64xf32>
    %135 = math.exp %134 : vector<8x64xf32>
    %cst_42 = arith.constant 1.000000e+00 : f32
    %136 = vector.broadcast %cst_42 : f32 to vector<8x64xf32>
    %137 = arith.addf %136, %135 : vector<8x64xf32>
    %138 = arith.divf %136, %137 : vector<8x64xf32>
    %139 = arith.mulf %130, %107 : vector<8x64xf32>
    %140 = arith.mulf %124, %132 : vector<8x64xf32>
    %141 = arith.addf %139, %140 : vector<8x64xf32>
    %142 = math.tanh %141 : vector<8x64xf32>
    %143 = arith.mulf %138, %142 : vector<8x64xf32>
    %144 = arith.index_cast %c3_i32 : i32 to index
    %c0_43 = arith.constant 0 : index
    %c0_44 = arith.constant 0 : index
    %145 = vector.load %arg12[%144, %c0_43, %c0_44] : memref<8x8x64xf32, #tpu.memory_space<vmem>>, vector<1x8x64xf32>
    %146 = vector.shape_cast %145 : vector<1x8x64xf32> to vector<8x64xf32>
    %147 = vector.shape_cast %143 : vector<8x64xf32> to vector<1x8x64xf32>
    tpu.vector_store %arg12[%144, %c0_43, %c0_44], %147 {strides = array<i32>} : memref<8x8x64xf32, #tpu.memory_space<vmem>>, vector<1x8x64xf32>,
    %c4_i32 = arith.constant 4 : i32
    %cst_45 = arith.constant dense<0.000000e+00> : vector<8x256xf32>
    %148 = tpu.matmul %143, %9, %cst_45 {dimension_numbers = #tpu.dot_dimension_numbers<[1], [0], [0], [1], [0, 0, 1, 1], [], []>} : vector<8x64xf32>, vector<64x256xf32>, vector<8x256xf32> -> vector<8x256xf32>
    %149 = arith.index_cast %c4_i32 : i32 to index
    %c0_46 = arith.constant 0 : index
    %c0_47 = arith.constant 0 : index
    %150 = vector.load %arg11[%149, %c0_46, %c0_47] : memref<8x8x256xf32, #tpu.memory_space<vmem>>, vector<1x8x256xf32>
    %151 = vector.shape_cast %150 : vector<1x8x256xf32> to vector<8x256xf32>
    %152 = arith.addf %148, %151 : vector<8x256xf32>
    %153 = vector.extract_strided_slice %152 {offsets = [0, 0], sizes = [8, 64], strides = [1, 1]} : vector<8x256xf32> to vector<8x64xf32>
    %154 = arith.negf %153 : vector<8x64xf32>
    %155 = math.exp %154 : vector<8x64xf32>
    %cst_48 = arith.constant 1.000000e+00 : f32
    %156 = vector.broadcast %cst_48 : f32 to vector<8x64xf32>
    %157 = arith.addf %156, %155 : vector<8x64xf32>
    %158 = arith.divf %156, %157 : vector<8x64xf32>
    %159 = vector.extract_strided_slice %152 {offsets = [0, 64], sizes = [8, 64], strides = [1, 1]} : vector<8x256xf32> to vector<8x64xf32>
    %160 = arith.negf %159 : vector<8x64xf32>
    %161 = math.exp %160 : vector<8x64xf32>
    %cst_49 = arith.constant 1.000000e+00 : f32
    %162 = vector.broadcast %cst_49 : f32 to vector<8x64xf32>
    %163 = arith.addf %162, %161 : vector<8x64xf32>
    %164 = arith.divf %162, %163 : vector<8x64xf32>
    %165 = vector.extract_strided_slice %152 {offsets = [0, 128], sizes = [8, 64], strides = [1, 1]} : vector<8x256xf32> to vector<8x64xf32>
    %166 = math.tanh %165 : vector<8x64xf32>
    %167 = vector.extract_strided_slice %152 {offsets = [0, 192], sizes = [8, 64], strides = [1, 1]} : vector<8x256xf32> to vector<8x64xf32>
    %168 = arith.negf %167 : vector<8x64xf32>
    %169 = math.exp %168 : vector<8x64xf32>
    %cst_50 = arith.constant 1.000000e+00 : f32
    %170 = vector.broadcast %cst_50 : f32 to vector<8x64xf32>
    %171 = arith.addf %170, %169 : vector<8x64xf32>
    %172 = arith.divf %170, %171 : vector<8x64xf32>
    %173 = arith.mulf %164, %141 : vector<8x64xf32>
    %174 = arith.mulf %158, %166 : vector<8x64xf32>
    %175 = arith.addf %173, %174 : vector<8x64xf32>
    %176 = math.tanh %175 : vector<8x64xf32>
    %177 = arith.mulf %172, %176 : vector<8x64xf32>
    %178 = arith.index_cast %c4_i32 : i32 to index
    %c0_51 = arith.constant 0 : index
    %c0_52 = arith.constant 0 : index
    %179 = vector.load %arg12[%178, %c0_51, %c0_52] : memref<8x8x64xf32, #tpu.memory_space<vmem>>, vector<1x8x64xf32>
    %180 = vector.shape_cast %179 : vector<1x8x64xf32> to vector<8x64xf32>
    %181 = vector.shape_cast %177 : vector<8x64xf32> to vector<1x8x64xf32>
    tpu.vector_store %arg12[%178, %c0_51, %c0_52], %181 {strides = array<i32>} : memref<8x8x64xf32, #tpu.memory_space<vmem>>, vector<1x8x64xf32>,
    %c5_i32 = arith.constant 5 : i32
    %cst_53 = arith.constant dense<0.000000e+00> : vector<8x256xf32>
    %182 = tpu.matmul %177, %9, %cst_53 {dimension_numbers = #tpu.dot_dimension_numbers<[1], [0], [0], [1], [0, 0, 1, 1], [], []>} : vector<8x64xf32>, vector<64x256xf32>, vector<8x256xf32> -> vector<8x256xf32>
    %183 = arith.index_cast %c5_i32 : i32 to index
    %c0_54 = arith.constant 0 : index
    %c0_55 = arith.constant 0 : index
    %184 = vector.load %arg11[%183, %c0_54, %c0_55] : memref<8x8x256xf32, #tpu.memory_space<vmem>>, vector<1x8x256xf32>
    %185 = vector.shape_cast %184 : vector<1x8x256xf32> to vector<8x256xf32>
    %186 = arith.addf %182, %185 : vector<8x256xf32>
    %187 = vector.extract_strided_slice %186 {offsets = [0, 0], sizes = [8, 64], strides = [1, 1]} : vector<8x256xf32> to vector<8x64xf32>
    %188 = arith.negf %187 : vector<8x64xf32>
    %189 = math.exp %188 : vector<8x64xf32>
    %cst_56 = arith.constant 1.000000e+00 : f32
    %190 = vector.broadcast %cst_56 : f32 to vector<8x64xf32>
    %191 = arith.addf %190, %189 : vector<8x64xf32>
    %192 = arith.divf %190, %191 : vector<8x64xf32>
    %193 = vector.extract_strided_slice %186 {offsets = [0, 64], sizes = [8, 64], strides = [1, 1]} : vector<8x256xf32> to vector<8x64xf32>
    %194 = arith.negf %193 : vector<8x64xf32>
    %195 = math.exp %194 : vector<8x64xf32>
    %cst_57 = arith.constant 1.000000e+00 : f32
    %196 = vector.broadcast %cst_57 : f32 to vector<8x64xf32>
    %197 = arith.addf %196, %195 : vector<8x64xf32>
    %198 = arith.divf %196, %197 : vector<8x64xf32>
    %199 = vector.extract_strided_slice %186 {offsets = [0, 128], sizes = [8, 64], strides = [1, 1]} : vector<8x256xf32> to vector<8x64xf32>
    %200 = math.tanh %199 : vector<8x64xf32>
    %201 = vector.extract_strided_slice %186 {offsets = [0, 192], sizes = [8, 64], strides = [1, 1]} : vector<8x256xf32> to vector<8x64xf32>
    %202 = arith.negf %201 : vector<8x64xf32>
    %203 = math.exp %202 : vector<8x64xf32>
    %cst_58 = arith.constant 1.000000e+00 : f32
    %204 = vector.broadcast %cst_58 : f32 to vector<8x64xf32>
    %205 = arith.addf %204, %203 : vector<8x64xf32>
    %206 = arith.divf %204, %205 : vector<8x64xf32>
    %207 = arith.mulf %198, %175 : vector<8x64xf32>
    %208 = arith.mulf %192, %200 : vector<8x64xf32>
    %209 = arith.addf %207, %208 : vector<8x64xf32>
    %210 = math.tanh %209 : vector<8x64xf32>
    %211 = arith.mulf %206, %210 : vector<8x64xf32>
    %212 = arith.index_cast %c5_i32 : i32 to index
    %c0_59 = arith.constant 0 : index
    %c0_60 = arith.constant 0 : index
    %213 = vector.load %arg12[%212, %c0_59, %c0_60] : memref<8x8x64xf32, #tpu.memory_space<vmem>>, vector<1x8x64xf32>
    %214 = vector.shape_cast %213 : vector<1x8x64xf32> to vector<8x64xf32>
    %215 = vector.shape_cast %211 : vector<8x64xf32> to vector<1x8x64xf32>
    tpu.vector_store %arg12[%212, %c0_59, %c0_60], %215 {strides = array<i32>} : memref<8x8x64xf32, #tpu.memory_space<vmem>>, vector<1x8x64xf32>,
    %c6_i32 = arith.constant 6 : i32
    %cst_61 = arith.constant dense<0.000000e+00> : vector<8x256xf32>
    %216 = tpu.matmul %211, %9, %cst_61 {dimension_numbers = #tpu.dot_dimension_numbers<[1], [0], [0], [1], [0, 0, 1, 1], [], []>} : vector<8x64xf32>, vector<64x256xf32>, vector<8x256xf32> -> vector<8x256xf32>
    %217 = arith.index_cast %c6_i32 : i32 to index
    %c0_62 = arith.constant 0 : index
    %c0_63 = arith.constant 0 : index
    %218 = vector.load %arg11[%217, %c0_62, %c0_63] : memref<8x8x256xf32, #tpu.memory_space<vmem>>, vector<1x8x256xf32>
    %219 = vector.shape_cast %218 : vector<1x8x256xf32> to vector<8x256xf32>
    %220 = arith.addf %216, %219 : vector<8x256xf32>
    %221 = vector.extract_strided_slice %220 {offsets = [0, 0], sizes = [8, 64], strides = [1, 1]} : vector<8x256xf32> to vector<8x64xf32>
    %222 = arith.negf %221 : vector<8x64xf32>
    %223 = math.exp %222 : vector<8x64xf32>
    %cst_64 = arith.constant 1.000000e+00 : f32
    %224 = vector.broadcast %cst_64 : f32 to vector<8x64xf32>
    %225 = arith.addf %224, %223 : vector<8x64xf32>
    %226 = arith.divf %224, %225 : vector<8x64xf32>
    %227 = vector.extract_strided_slice %220 {offsets = [0, 64], sizes = [8, 64], strides = [1, 1]} : vector<8x256xf32> to vector<8x64xf32>
    %228 = arith.negf %227 : vector<8x64xf32>
    %229 = math.exp %228 : vector<8x64xf32>
    %cst_65 = arith.constant 1.000000e+00 : f32
    %230 = vector.broadcast %cst_65 : f32 to vector<8x64xf32>
    %231 = arith.addf %230, %229 : vector<8x64xf32>
    %232 = arith.divf %230, %231 : vector<8x64xf32>
    %233 = vector.extract_strided_slice %220 {offsets = [0, 128], sizes = [8, 64], strides = [1, 1]} : vector<8x256xf32> to vector<8x64xf32>
    %234 = math.tanh %233 : vector<8x64xf32>
    %235 = vector.extract_strided_slice %220 {offsets = [0, 192], sizes = [8, 64], strides = [1, 1]} : vector<8x256xf32> to vector<8x64xf32>
    %236 = arith.negf %235 : vector<8x64xf32>
    %237 = math.exp %236 : vector<8x64xf32>
    %cst_66 = arith.constant 1.000000e+00 : f32
    %238 = vector.broadcast %cst_66 : f32 to vector<8x64xf32>
    %239 = arith.addf %238, %237 : vector<8x64xf32>
    %240 = arith.divf %238, %239 : vector<8x64xf32>
    %241 = arith.mulf %232, %209 : vector<8x64xf32>
    %242 = arith.mulf %226, %234 : vector<8x64xf32>
    %243 = arith.addf %241, %242 : vector<8x64xf32>
    %244 = math.tanh %243 : vector<8x64xf32>
    %245 = arith.mulf %240, %244 : vector<8x64xf32>
    %246 = arith.index_cast %c6_i32 : i32 to index
    %c0_67 = arith.constant 0 : index
    %c0_68 = arith.constant 0 : index
    %247 = vector.load %arg12[%246, %c0_67, %c0_68] : memref<8x8x64xf32, #tpu.memory_space<vmem>>, vector<1x8x64xf32>
    %248 = vector.shape_cast %247 : vector<1x8x64xf32> to vector<8x64xf32>
    %249 = vector.shape_cast %245 : vector<8x64xf32> to vector<1x8x64xf32>
    tpu.vector_store %arg12[%246, %c0_67, %c0_68], %249 {strides = array<i32>} : memref<8x8x64xf32, #tpu.memory_space<vmem>>, vector<1x8x64xf32>,
    %c7_i32 = arith.constant 7 : i32
    %cst_69 = arith.constant dense<0.000000e+00> : vector<8x256xf32>
    %250 = tpu.matmul %245, %9, %cst_69 {dimension_numbers = #tpu.dot_dimension_numbers<[1], [0], [0], [1], [0, 0, 1, 1], [], []>} : vector<8x64xf32>, vector<64x256xf32>, vector<8x256xf32> -> vector<8x256xf32>
    %251 = arith.index_cast %c7_i32 : i32 to index
    %c0_70 = arith.constant 0 : index
    %c0_71 = arith.constant 0 : index
    %252 = vector.load %arg11[%251, %c0_70, %c0_71] : memref<8x8x256xf32, #tpu.memory_space<vmem>>, vector<1x8x256xf32>
    %253 = vector.shape_cast %252 : vector<1x8x256xf32> to vector<8x256xf32>
    %254 = arith.addf %250, %253 : vector<8x256xf32>
    %255 = vector.extract_strided_slice %254 {offsets = [0, 0], sizes = [8, 64], strides = [1, 1]} : vector<8x256xf32> to vector<8x64xf32>
    %256 = arith.negf %255 : vector<8x64xf32>
    %257 = math.exp %256 : vector<8x64xf32>
    %cst_72 = arith.constant 1.000000e+00 : f32
    %258 = vector.broadcast %cst_72 : f32 to vector<8x64xf32>
    %259 = arith.addf %258, %257 : vector<8x64xf32>
    %260 = arith.divf %258, %259 : vector<8x64xf32>
    %261 = vector.extract_strided_slice %254 {offsets = [0, 64], sizes = [8, 64], strides = [1, 1]} : vector<8x256xf32> to vector<8x64xf32>
    %262 = arith.negf %261 : vector<8x64xf32>
    %263 = math.exp %262 : vector<8x64xf32>
    %cst_73 = arith.constant 1.000000e+00 : f32
    %264 = vector.broadcast %cst_73 : f32 to vector<8x64xf32>
    %265 = arith.addf %264, %263 : vector<8x64xf32>
    %266 = arith.divf %264, %265 : vector<8x64xf32>
    %267 = vector.extract_strided_slice %254 {offsets = [0, 128], sizes = [8, 64], strides = [1, 1]} : vector<8x256xf32> to vector<8x64xf32>
    %268 = math.tanh %267 : vector<8x64xf32>
    %269 = vector.extract_strided_slice %254 {offsets = [0, 192], sizes = [8, 64], strides = [1, 1]} : vector<8x256xf32> to vector<8x64xf32>
    %270 = arith.negf %269 : vector<8x64xf32>
    %271 = math.exp %270 : vector<8x64xf32>
    %cst_74 = arith.constant 1.000000e+00 : f32
    %272 = vector.broadcast %cst_74 : f32 to vector<8x64xf32>
    %273 = arith.addf %272, %271 : vector<8x64xf32>
    %274 = arith.divf %272, %273 : vector<8x64xf32>
    %275 = arith.mulf %266, %243 : vector<8x64xf32>
    %276 = arith.mulf %260, %268 : vector<8x64xf32>
    %277 = arith.addf %275, %276 : vector<8x64xf32>
    %278 = math.tanh %277 : vector<8x64xf32>
    %279 = arith.mulf %274, %278 : vector<8x64xf32>
    %280 = arith.index_cast %c7_i32 : i32 to index
    %c0_75 = arith.constant 0 : index
    %c0_76 = arith.constant 0 : index
    %281 = vector.load %arg12[%280, %c0_75, %c0_76] : memref<8x8x64xf32, #tpu.memory_space<vmem>>, vector<1x8x64xf32>
    %282 = vector.shape_cast %281 : vector<1x8x64xf32> to vector<8x64xf32>
    %283 = vector.shape_cast %279 : vector<8x64xf32> to vector<1x8x64xf32>
    tpu.vector_store %arg12[%280, %c0_75, %c0_76], %283 {strides = array<i32>} : memref<8x8x64xf32, #tpu.memory_space<vmem>>, vector<1x8x64xf32>,
    %c8_i32 = arith.constant 8 : i32
    %c0_i32_77 = arith.constant 0 : i32
    %c8_i32_78 = arith.constant 8 : i32
    %284 = arith.addi %c0_i32_77, %c8_i32_78 : i32
    %c1_i32_79 = arith.constant 1 : i32
    scf.for %arg14 = %c0_i32_77 to %284 step %c1_i32_79  : i32 {
      %c1_i32_111 = arith.constant 1 : i32
      %335 = arith.muli %arg14, %c1_i32_111 : i32
      %c0_i32_112 = arith.constant 0 : i32
      %336 = arith.addi %c0_i32_112, %335 : i32
      %c7_i32_113 = arith.constant 7 : i32
      %337 = arith.subi %c7_i32_113, %336 : i32
      %338 = arith.index_cast %337 : i32 to index
      %c0_114 = arith.constant 0 : index
      %c0_115 = arith.constant 0 : index
      %339 = vector.load %arg12[%338, %c0_114, %c0_115] : memref<8x8x64xf32, #tpu.memory_space<vmem>>, vector<1x8x64xf32>
      %340 = vector.shape_cast %339 : vector<1x8x64xf32> to vector<8x64xf32>
      %341 = vector.extract_strided_slice %340 {offsets = [0, 32], sizes = [8, 32], strides = [1, 1]} : vector<8x64xf32> to vector<8x32xf32>
      %342 = arith.index_cast %336 : i32 to index
      %c0_116 = arith.constant 0 : index
      %c0_117 = arith.constant 0 : index
      %343 = vector.load %arg13[%342, %c0_116, %c0_117] : memref<8x8x32xf32, #tpu.memory_space<vmem>>, vector<1x8x32xf32>
      %344 = vector.shape_cast %343 : vector<1x8x32xf32> to vector<8x32xf32>
      %345 = vector.shape_cast %341 : vector<8x32xf32> to vector<1x8x32xf32>
      tpu.vector_store %arg13[%342, %c0_116, %c0_117], %345 {strides = array<i32>} : memref<8x8x32xf32, #tpu.memory_space<vmem>>, vector<1x8x32xf32>,
    }
    %c8_i32_80 = arith.constant 8 : i32
    %c0_81 = arith.constant 0 : index
    %c0_82 = arith.constant 0 : index
    %c0_83 = arith.constant 0 : index
    %285 = vector.load %arg12[%c0_81, %c0_82, %c0_83] : memref<8x8x64xf32, #tpu.memory_space<vmem>>, vector<8x8x64xf32>
    %286 = vector.extract_strided_slice %285 {offsets = [0, 0, 0], sizes = [8, 8, 32], strides = [1, 1, 1]} : vector<8x8x64xf32> to vector<8x8x32xf32>
    %287 = vector.shape_cast %286 : vector<8x8x32xf32> to vector<64x32xf32>
    %c0_84 = arith.constant 0 : index
    %c0_85 = arith.constant 0 : index
    %c0_86 = arith.constant 0 : index
    %288 = vector.load %arg13[%c0_84, %c0_85, %c0_86] : memref<8x8x32xf32, #tpu.memory_space<vmem>>, vector<8x8x32xf32>
    %289 = vector.shape_cast %288 : vector<8x8x32xf32> to vector<64x32xf32>
    %c0_87 = arith.constant 0 : index
    %c0_88 = arith.constant 0 : index
    %290 = vector.load %arg6[%c0_87, %c0_88] : memref<64x192xf32, #tpu.memory_space<vmem>>, vector<64x192xf32>
    %291 = vector.extract_strided_slice %290 {offsets = [0, 0], sizes = [32, 192], strides = [1, 1]} : vector<64x192xf32> to vector<32x192xf32>
    %cst_89 = arith.constant dense<0.000000e+00> : vector<64x192xf32>
    %292 = tpu.matmul %287, %291, %cst_89 {dimension_numbers = #tpu.dot_dimension_numbers<[1], [0], [0], [1], [0, 0, 1, 1], [], []>} : vector<64x32xf32>, vector<32x192xf32>, vector<64x192xf32> -> vector<64x192xf32>
    %293 = vector.extract_strided_slice %290 {offsets = [32, 0], sizes = [32, 192], strides = [1, 1]} : vector<64x192xf32> to vector<32x192xf32>
    %cst_90 = arith.constant dense<0.000000e+00> : vector<64x192xf32>
    %294 = tpu.matmul %289, %293, %cst_90 {dimension_numbers = #tpu.dot_dimension_numbers<[1], [0], [0], [1], [0, 0, 1, 1], [], []>} : vector<64x32xf32>, vector<32x192xf32>, vector<64x192xf32> -> vector<64x192xf32>
    %295 = arith.addf %292, %294 : vector<64x192xf32>
    %c0_91 = arith.constant 0 : index
    %c0_92 = arith.constant 0 : index
    %296 = vector.load %arg7[%c0_91, %c0_92] : memref<1x192xf32, #tpu.memory_space<vmem>>, vector<1x192xf32>
    %297 = vector.broadcast %296 : vector<1x192xf32> to vector<64x192xf32>
    %298 = arith.addf %295, %297 : vector<64x192xf32>
    %299 = vector.shape_cast %298 : vector<64x192xf32> to vector<8x8x192xf32>
    %300 = tpu.transpose %299, [1, 0, 2] : vector<8x8x192xf32> -> vector<8x8x192xf32>
    %301 = vector.extract_strided_slice %300 {offsets = [0, 0, 0], sizes = [8, 8, 64], strides = [1, 1, 1]} : vector<8x8x192xf32> to vector<8x8x64xf32>
    %302 = vector.extract_strided_slice %300 {offsets = [0, 0, 64], sizes = [8, 8, 64], strides = [1, 1, 1]} : vector<8x8x192xf32> to vector<8x8x64xf32>
    %303 = vector.extract_strided_slice %300 {offsets = [0, 0, 128], sizes = [8, 8, 64], strides = [1, 1, 1]} : vector<8x8x192xf32> to vector<8x8x64xf32>
    "tpu.trace_start"() <{level = 10 : i32, message = "bqe,bke->bqk"}> : () -> ()
    %cst_93 = arith.constant dense<0.000000e+00> : vector<8x8x8xf32>
    %304 = tpu.matmul %301, %302, %cst_93 {dimension_numbers = #tpu.dot_dimension_numbers<[2], [2], [1], [1], [0, 0, 0, 1, 1, 1], [0], [0]>} : vector<8x8x64xf32>, vector<8x8x64xf32>, vector<8x8x8xf32> -> vector<8x8x8xf32>
    "tpu.trace_stop"() : () -> ()
    %c0_94 = arith.constant 0 : index
    %c0_95 = arith.constant 0 : index
    %305 = vector.load %arg2[%c0_94, %c0_95] : memref<8x8xf32, #tpu.memory_space<vmem>>, vector<8x8xf32>
    %cst_96 = arith.constant 5.000000e-01 : f32
    %306 = vector.broadcast %cst_96 : f32 to vector<8x8xf32>
    %307 = arith.cmpf ogt, %305, %306 : vector<8x8xf32>
    %cst_97 = arith.constant -1.000000e+30 : f32
    %cst_98 = arith.constant 0.000000e+00 : f32
    %308 = vector.broadcast %cst_97 : f32 to vector<8x8xf32>
    %309 = vector.broadcast %cst_98 : f32 to vector<8x8xf32>
    %310 = arith.select %307, %308, %309 : vector<8x8xi1>, vector<8x8xf32>
    %311 = vector.shape_cast %310 : vector<8x8xf32> to vector<8x1x8xf32>
    %312 = vector.broadcast %311 : vector<8x1x8xf32> to vector<8x8x8xf32>
    %313 = arith.addf %304, %312 : vector<8x8x8xf32>
    %cst_99 = arith.constant dense<0xFF800000> : vector<8x8xf32>
    %314 = vector.multi_reduction <maximumf>, %313, %cst_99 [2] : vector<8x8x8xf32> to vector<8x8xf32>
    %315 = vector.shape_cast %314 : vector<8x8xf32> to vector<8x8x1xf32>
    %316 = vector.broadcast %315 : vector<8x8x1xf32> to vector<8x8x8xf32>
    %317 = arith.subf %313, %316 : vector<8x8x8xf32>
    %318 = math.exp %317 : vector<8x8x8xf32>
    %cst_100 = arith.constant dense<0.000000e+00> : vector<8x8xf32>
    %319 = vector.multi_reduction <add>, %318, %cst_100 [2] : vector<8x8x8xf32> to vector<8x8xf32>
    %320 = vector.shape_cast %319 : vector<8x8xf32> to vector<8x8x1xf32>
    %321 = vector.broadcast %320 : vector<8x8x1xf32> to vector<8x8x8xf32>
    %322 = arith.divf %318, %321 : vector<8x8x8xf32>
    %cst_101 = arith.constant dense<0.000000e+00> : vector<8x8xf32>
    %323 = vector.multi_reduction <add>, %322, %cst_101 [1] : vector<8x8x8xf32> to vector<8x8xf32>
    %324 = vector.shape_cast %323 : vector<8x8xf32> to vector<8x1x8xf32>
    %cst_102 = arith.constant 8.000000e+00 : f32
    %325 = vector.broadcast %cst_102 : f32 to vector<8x1x8xf32>
    %326 = arith.divf %324, %325 : vector<8x1x8xf32>
    "tpu.trace_start"() <{level = 10 : i32, message = "bqk,bke->bqe"}> : () -> ()
    %cst_103 = arith.constant dense<0.000000e+00> : vector<8x1x64xf32>
    %327 = tpu.matmul %326, %303, %cst_103 {dimension_numbers = #tpu.dot_dimension_numbers<[2], [1], [1], [2], [0, 0, 0, 1, 1, 2], [0], [0]>} : vector<8x1x8xf32>, vector<8x8x64xf32>, vector<8x1x64xf32> -> vector<8x1x64xf32>
    "tpu.trace_stop"() : () -> ()
    %328 = vector.shape_cast %327 : vector<8x1x64xf32> to vector<8x64xf32>
    %c0_104 = arith.constant 0 : index
    %c0_105 = arith.constant 0 : index
    %329 = vector.load %arg8[%c0_104, %c0_105] : memref<64x64xf32, #tpu.memory_space<vmem>>, vector<64x64xf32>
    %cst_106 = arith.constant dense<0.000000e+00> : vector<8x64xf32>
    %330 = tpu.matmul %328, %329, %cst_106 {dimension_numbers = #tpu.dot_dimension_numbers<[1], [0], [0], [1], [0, 0, 1, 1], [], []>} : vector<8x64xf32>, vector<64x64xf32>, vector<8x64xf32> -> vector<8x64xf32>
    %c0_107 = arith.constant 0 : index
    %c0_108 = arith.constant 0 : index
    %331 = vector.load %arg9[%c0_107, %c0_108] : memref<1x64xf32, #tpu.memory_space<vmem>>, vector<1x64xf32>
    %332 = vector.broadcast %331 : vector<1x64xf32> to vector<8x64xf32>
    %333 = arith.addf %330, %332 : vector<8x64xf32>
    %c0_109 = arith.constant 0 : index
    %c0_110 = arith.constant 0 : index
    %334 = vector.load %arg10[%c0_109, %c0_110] : memref<8x64xf32, #tpu.memory_space<vmem>>, vector<8x64xf32>
    tpu.vector_store %arg10[%c0_109, %c0_110], %333 {strides = array<i32>} : memref<8x64xf32, #tpu.memory_space<vmem>>, vector<8x64xf32>,
    return
  }
  func.func @transform_0(%arg0: i32) -> (i32, i32, i32) {
    %c0_i32 = arith.constant 0 : i32
    %c0_i32_0 = arith.constant 0 : i32
    %c0_i32_1 = arith.constant 0 : i32
    return %c0_i32, %arg0, %c0_i32_0 : i32, i32, i32
  }
  func.func @transform_1(%arg0: i32) -> (i32, i32) {
    %c0_i32 = arith.constant 0 : i32
    %c0_i32_0 = arith.constant 0 : i32
    return %arg0, %c0_i32 : i32, i32
  }
  func.func @transform_2(%arg0: i32) -> (i32, i32) {
    %c0_i32 = arith.constant 0 : i32
    %c0_i32_0 = arith.constant 0 : i32
    %c0_i32_1 = arith.constant 0 : i32
    return %c0_i32, %c0_i32_0 : i32, i32
  }
  func.func @transform_3(%arg0: i32) -> (i32, i32) {
    %c0_i32 = arith.constant 0 : i32
    %c0_i32_0 = arith.constant 0 : i32
    %c0_i32_1 = arith.constant 0 : i32
    return %c0_i32, %c0_i32_0 : i32, i32
  }
  func.func @transform_4(%arg0: i32) -> (i32, i32) {
    %c0_i32 = arith.constant 0 : i32
    %c0_i32_0 = arith.constant 0 : i32
    %c0_i32_1 = arith.constant 0 : i32
    return %c0_i32, %c0_i32_0 : i32, i32
  }
  func.func @transform_5(%arg0: i32) -> (i32, i32) {
    %c0_i32 = arith.constant 0 : i32
    %c0_i32_0 = arith.constant 0 : i32
    %c0_i32_1 = arith.constant 0 : i32
    return %c0_i32, %c0_i32_0 : i32, i32
  }
  func.func @transform_6(%arg0: i32) -> (i32, i32) {
    %c0_i32 = arith.constant 0 : i32
    %c0_i32_0 = arith.constant 0 : i32
    %c0_i32_1 = arith.constant 0 : i32
    return %c0_i32, %c0_i32_0 : i32, i32
  }
  func.func @transform_7(%arg0: i32) -> (i32, i32) {
    %c0_i32 = arith.constant 0 : i32
    %c0_i32_0 = arith.constant 0 : i32
    %c0_i32_1 = arith.constant 0 : i32
    return %c0_i32, %c0_i32_0 : i32, i32
  }
  func.func @transform_8(%arg0: i32) -> (i32, i32) {
    %c0_i32 = arith.constant 0 : i32
    %c0_i32_0 = arith.constant 0 : i32
    %c0_i32_1 = arith.constant 0 : i32
    return %c0_i32, %c0_i32_0 : i32, i32
  }
  func.func @transform_9(%arg0: i32) -> (i32, i32) {
    %c0_i32 = arith.constant 0 : i32
    %c0_i32_0 = arith.constant 0 : i32
    return %arg0, %c0_i32 : i32, i32
  }
}

</mosaic_0001>

<bundles_post_ra>
// kernel: tpu_custom_call.1
= control target key start
LH: loop header
LB: loop body
LE: loop exit
PB: predicated region body
PF: predicated region fallthrough
CT: control target
= control target key end

     0   :  { %14 = vsyncpa [#allocation6], 0  ;;  %s3586_s0 = inlined_call_operand.hbm [shape: f32[8,8,32], index: 0, kind: input, shape index: {}]   ;;  %s3587_s1 = inlined_call_operand.hbm [shape: f32[8,8], index: 1, kind: input, shape index: {}]   ;;  %s3588_s2 = inlined_call_operand.hbm [shape: f32[32,256], index: 2, kind: input, shape index: {}]   ;;  %s3589_s3 = inlined_call_operand.hbm [shape: f32[64,256], index: 3, kind: input, shape index: {}]   ;;  %s3590_s4 = inlined_call_operand.vmem [shape: f32[1,256], index: 4, kind: input, shape index: {}]   ;;  %s3591_s5 = inlined_call_operand.hbm [shape: f32[64,192], index: 5, kind: input, shape index: {}]   ;;  %s3592_s6 = inlined_call_operand.vmem [shape: f32[1,192], index: 6, kind: input, shape index: {}]   ;;  %s3593_s7 = inlined_call_operand.hbm [shape: f32[64,64], index: 7, kind: input, shape index: {}]   ;;  %s3594_s8 = inlined_call_operand.vmem [shape: f32[1,64], index: 8, kind: input, shape index: {}]   ;;  %s3595_s9 = inlined_call_operand.hbm [shape: f32[8,64], index: 9, kind: output, shape index: {}]  }
   0x1   :  { %15 = vsyncpa [#allocation9], 0 }
   0x2   :  { %16 = vsyncpa [#allocation12], 0 }
   0x3   :  { %17 = vsyncpa [#allocation15], 0  ;;  %s37_s11 = sshll.u32 %s3587_s1, 4  ;;  %s38_s11 = int_to_ptr.hbm [resolvable:$true] %s37_s11 }
   0x4   :  { %18 = vsyncpa [#allocation7], 0  ;;  %s2821_s12 = smov [#allocation8]   ;;  %s60_s16 = sshll.u32 %s3589_s3, 4  ;;  %s61_s16 = int_to_ptr.hbm [resolvable:$true] %s60_s16 }
   0x5   :  { %s39_s13 = sshll.u32 %s2821_s12, 4  ;;  %s2822_s17 = smov [#allocation11]   ;;  %s40_s13 = int_to_ptr.vmem [resolvable:$true] %s39_s13 }
   0x6   :  { %42 = dma.hbm_to_vmem [thread:$0]  %s38_s11, 128, %s40_s13, [#allocation9]  }
   0x7   :  { %s62_s18 = sshll.u32 %s2822_s17, 4  ;;  %s23_s21 = sshll.u32 %s3586_s0, 4  ;;  %s63_s18 = int_to_ptr.vmem [resolvable:$true] %s62_s18  ;;  %s24_s21 = int_to_ptr.hbm [resolvable:$true] %s23_s21 }
   0x8   :  { %s2823_s1 = smov 256   ;;  %s2824_s22 = smov 16  }
   0x9   :  { %68 = dma.hbm_to_vmem [thread:$0]  %s61_s16, 2048, %s63_s18, [#allocation12], %s2823_s1, %s2823_s1, %s2824_s22  }
   0xa   :  { %s2825_s23 = smov [#allocation5]   ;;  %s47_s27 = sshll.u32 %s3588_s2, 4  ;;  %s48_s27 = int_to_ptr.hbm [resolvable:$true] %s47_s27 }
   0xb   :  { %s25_s24 = sshll.u32 %s2825_s23, 4  ;;  %s2826_s3 = smov 128   ;;  %s26_s24 = int_to_ptr.vmem [resolvable:$true] %s25_s24 }
   0xc   :  { %s2827_s28 = smov 8   ;;  %s2828_s29 = smov [#allocation10]  }
   0xd   :  { %31 = dma.hbm_to_vmem [thread:$0]  %s24_s21, 1024, %s26_s24, [#allocation6], %s2826_s3, %s2826_s3, %s2827_s28  }
   0xe   :  { %s49_s30 = sshll.u32 %s2828_s29, 4  ;;  %s75_s11 = sshll.u32 %s3591_s5, 4  ;;  %s50_s30 = int_to_ptr.vmem [resolvable:$true] %s49_s30  ;;  %s76_s11 = int_to_ptr.hbm [resolvable:$true] %s75_s11 }
   0xf   :  { %55 = dma.hbm_to_vmem [thread:$0]  %s48_s27, 1024, %s50_s30, [#allocation9], %s2823_s1, %s2823_s1, %s2824_s22  }
  0x10   :  { %s90_s14 = sshll.u32 %s3593_s7, 4  ;;  %s2829_s15 = smov [#allocation13]   ;;  %s91_s14 = int_to_ptr.hbm [resolvable:$true] %s90_s14 }
  0x11   :  { %s77_s16 = sshll.u32 %s2829_s15, 4  ;;  %s2830_s2 = smov [#allocation14]   ;;  %s78_s16 = int_to_ptr.vmem [resolvable:$true] %s77_s16 }
  0x12   :  { %83 = dma.hbm_to_vmem [thread:$0]  %s76_s11, 2048, %s78_s16, [#allocation12], %s2823_s1, %s2823_s1, %s2824_s22  }
  0x13   :  { %s92_s17 = sshll.u32 %s2830_s2, 4  ;;  %s93_s17 = int_to_ptr.vmem [resolvable:$true] %s92_s17 }
  0x14   :  { %98 = dma.hbm_to_vmem [thread:$0]  %s91_s14, 1024, %s93_s17, [#allocation15], %s2826_s3, %s2826_s3, %s2827_s28  }
  0x15   :  { %2807 = dma.done.wait [#allocation6], 1024  }
  0x16   :  { %2808 = vsyncadd [#allocation6], 4294966272 }
  0x17   :  { %2809 = dma.done.wait [#allocation9], 1152  }
  0x18   :  { %2810 = vsyncadd [#allocation9], 4294966144 }
  0x19   :  { %2811 = dma.done.wait [#allocation12], 4096  }
  0x1a   :  { %2812 = vsyncadd [#allocation12], 4294963200 }
  0x1b   :  { %2813 = dma.done.wait [#allocation15], 1024  }
  0x1c   :  { %2814 = vsyncadd [#allocation15], 4294966272  ;;  %v2906_v0 = vld [vmem:[#allocation11 + $0x70] sm:$0xff]  ;;  %v2908_v1 = vld [vmem:[#allocation11 + $0x60] sm:$0xff]  ;;  %vm147_vm0 = vcmask 261120   ;;  %v2831_v25 = vmov 0.0  }
  0x1d   :  { %300 = vmatpush.msra.mxu2 %v2906_v0  ;;  %v2911_v2 = vld [vmem:[#allocation11 + $0x78] sm:$0xff]  ;;  %v2913_v3 = vld [vmem:[#allocation11 + $0x50] sm:$0xff]  ;;  %v2916_v4 = vld [vmem:[#allocation11 + $0x68] sm:$0xff]  ;;  %vm288_vm9 = vcmask 523264   ;;  %s2817_s18 = smov 0  }
  0x1e   :  { %320 = vmatpush.msra.mxu3 %v2911_v2  ;;  %v139_v5 = vld [vmem:[#allocation10 + $0x30] sm:$0xff]  ;;  %v2919_v6 = vld [vmem:[#allocation11 + $0x58] sm:$0xff]  ;;  %v137_v7 = vld [vmem:[#allocation10 + $0x20] sm:$0xff] }
  0x1f   :  { %301 = vmatpush.msra.mxu2 %v2908_v1  ;;  %184 = vmatpush.msra.mxu0 %v139_v5  ;;  %v2921_v8 = vld [vmem:[#allocation11 + $0x40] sm:$0xff]  ;;  %v135_v9 = vld [vmem:[#allocation10 + $0x10] sm:$0xff]  ;;  %v2925_v10 = vld [vmem:[#allocation11 + $0x48] sm:$0xff] }
  0x20   :  { %321 = vmatpush.msra.mxu3 %v2916_v4  ;;  %v2927_v11 = vld [vmem:[#allocation11 + $0x30] sm:$0xff]  ;;  %v133_v12 = vld [vmem:[#allocation10] sm:$0xff]  ;;  %v140_v13 = vld [vmem:[#allocation10 + $0x38] sm:$0xff] }
  0x21   :  { %302 = vmatpush.msra.mxu2 %v2913_v3  ;;  %185 = vmatpush.msra.mxu0 %v137_v7  ;;  %v2931_v14 = vld [vmem:[#allocation11 + $0x38] sm:$0xff]  ;;  %v2933_v16 = vld [vmem:[#allocation11 + $0x20] sm:$0xff]  ;;  %v138_v17 = vld [vmem:[#allocation10 + $0x28] sm:$0xff] }
  0x22   :  { %322 = vmatpush.msra.mxu3 %v2919_v6  ;;  %v125_v15 = vld [vmem:[#allocation5] sm:$0xff]  ;;  %225 = vmatpush.msra.mxu1 %v140_v13  ;;  %v2937_v18 = vld [vmem:[#allocation11 + $0x28] sm:$0xff]  ;;  %v2939_v19 = vld [vmem:[#allocation11 + $0x10] sm:$0xff] }
  0x23   :  { %303 = vmatpush.msra.mxu2 %v2921_v8  ;;  %186 = vmatpush.msra.mxu0 %v135_v9  ;;  %v136_v20 = vld [vmem:[#allocation10 + $0x18] sm:$0xff]  ;;  %v2946_v22 = vld [vmem:[#allocation11] sm:$0xff]  ;;  %v134_v23 = vld [vmem:[#allocation10 + $0x8] sm:$0xff] }
  0x24   :  { %323 = vmatpush.msra.mxu3 %v2925_v10  ;;  %v2944_v21 = vld [vmem:[#allocation11 + $0x18] sm:$0xff]  ;;  %226 = vmatpush.msra.mxu1 %v138_v17  ;;  %v2951_v24 = vld [vmem:[#allocation11 + $0x8] sm:$0xff]  ;;  %v126_v17 = vld [vmem:[#allocation5 + $0x8] sm:$0xff] }
  0x25   :  { %304 = vmatpush.msra.mxu2 %v2927_v11  ;;  %187 = vmatpush.msra.mxu0 %v133_v12  ;;  %v141_v26 = vld [vmem:[%s3590_s4] sm:$0x3]  ;;  %s2832_s4 = smov 64  }
  0x26   :  { %324 = vmatpush.msra.mxu3 %v2931_v14  ;;  %2370 = vmatmul.msk.f32.vlgmr.msra.gmra.mxu0 %vm147_vm0, %v125_v15  ;;  %v3025_v27 = vperm.slane %v141_v26, 0  ;;  %v3028_v35 = vperm.slane %v141_v26, 1 }
  0x27   :  { %305 = vmatpush.msra.mxu2 %v2933_v16  ;;  %695 = vmatpush.msrb.mxu0 %v2906_v0 }
  0x28   :  { %325 = vmatpush.msra.mxu3 %v2937_v18  ;;  %227 = vmatpush.msra.mxu1 %v136_v20 }
  0x29   :  { %306 = vmatpush.msra.mxu2 %v2939_v19  ;;  %696 = vmatpush.msrb.mxu0 %v2908_v1 }
  0x2a   :  { %326 = vmatpush.msra.mxu3 %v2944_v21  ;;  %228 = vmatpush.msra.mxu1 %v134_v23 }
  0x2b   :  { %307 = vmatpush.msra.mxu2 %v2946_v22  ;;  %2378 = vmatmul.msk.f32.vlgmr.msra.gmra.mxu1 %vm147_vm0, %v125_v15 }
  0x2c   :  { %308 = vmatmul.f32.vlgmr.msra.gmra.mxu2 %v2831_v25  ;;  %327 = vmatpush.msra.mxu3 %v2951_v24 }
  0x2d   :  { %328 = vmatmul.f32.vlgmr.msra.gmra.mxu3 %v2831_v25  ;;  %398 = vmatpush.msrb.mxu2 %v2906_v0 }
  0x2e   :  { %418 = vmatpush.msrb.mxu3 %v2911_v2  ;;  %697 = vmatpush.msrb.mxu0 %v2913_v3 }
  0x2f   :  { %715 = vmatpush.msrb.mxu1 %v2911_v2  ;;  %399 = vmatpush.msrb.mxu2 %v2908_v1 }
  0x30   :  { %419 = vmatpush.msrb.mxu3 %v2916_v4  ;;  %698 = vmatpush.msrb.mxu0 %v2921_v8 }
  0x31   :  { %716 = vmatpush.msrb.mxu1 %v2916_v4  ;;  %400 = vmatpush.msrb.mxu2 %v2913_v3 }
  0x32   :  { %420 = vmatpush.msrb.mxu3 %v2919_v6  ;;  %699 = vmatpush.msrb.mxu0 %v2927_v11 }
  0x33   :  { %717 = vmatpush.msrb.mxu1 %v2919_v6  ;;  %401 = vmatpush.msrb.mxu2 %v2921_v8 }
  0x34   :  { %421 = vmatpush.msrb.mxu3 %v2925_v10  ;;  %700 = vmatpush.msrb.mxu0 %v2933_v16 }
  0x35   :  { %718 = vmatpush.msrb.mxu1 %v2925_v10  ;;  %402 = vmatpush.msrb.mxu2 %v2927_v11 }
  0x36   :  { %422 = vmatpush.msrb.mxu3 %v2931_v14  ;;  %701 = vmatpush.msrb.mxu0 %v2939_v19 }
  0x37   :  { %719 = vmatpush.msrb.mxu1 %v2931_v14  ;;  %403 = vmatpush.msrb.mxu2 %v2933_v16 }
  0x38   :  { %423 = vmatpush.msrb.mxu3 %v2937_v18  ;;  %702 = vmatpush.msrb.mxu0 %v2946_v22 }
  0x39   :  { %720 = vmatpush.msrb.mxu1 %v2937_v18  ;;  %404 = vmatpush.msrb.mxu2 %v2939_v19 }
  0x3a   :  { %424 = vmatpush.msrb.mxu3 %v2944_v21  ;;  %893 = vmatpush.msra.mxu0 %v2906_v0 }
  0x3b   :  { %721 = vmatpush.msrb.mxu1 %v2944_v21  ;;  %405 = vmatpush.msrb.mxu2 %v2946_v22 }
  0x3c   :  { %425 = vmatpush.msrb.mxu3 %v2951_v24  ;;  %894 = vmatpush.msra.mxu0 %v2908_v1 }
  0x3d   :  { %497 = vmatpush.msra.mxu2 %v2906_v0  ;;  %722 = vmatpush.msrb.mxu1 %v2951_v24 }
  0x3e   :  { %517 = vmatpush.msra.mxu3 %v2911_v2  ;;  %895 = vmatpush.msra.mxu0 %v2913_v3 }
  0x3f   :  { %498 = vmatpush.msra.mxu2 %v2908_v1  ;;  %913 = vmatpush.msra.mxu1 %v2911_v2 }
  0x40   :  { %518 = vmatpush.msra.mxu3 %v2916_v4  ;;  %896 = vmatpush.msra.mxu0 %v2921_v8 }
  0x41   :  { %499 = vmatpush.msra.mxu2 %v2913_v3  ;;  %914 = vmatpush.msra.mxu1 %v2916_v4 }
  0x42   :  { %519 = vmatpush.msra.mxu3 %v2919_v6  ;;  %897 = vmatpush.msra.mxu0 %v2927_v11 }
  0x43   :  { %500 = vmatpush.msra.mxu2 %v2921_v8  ;;  %915 = vmatpush.msra.mxu1 %v2919_v6 }
  0x44   :  { %520 = vmatpush.msra.mxu3 %v2925_v10  ;;  %898 = vmatpush.msra.mxu0 %v2933_v16 }
  0x45   :  { %501 = vmatpush.msra.mxu2 %v2927_v11  ;;  %916 = vmatpush.msra.mxu1 %v2925_v10 }
  0x46   :  { %521 = vmatpush.msra.mxu3 %v2931_v14  ;;  %899 = vmatpush.msra.mxu0 %v2939_v19 }
  0x47   :  { %502 = vmatpush.msra.mxu2 %v2933_v16  ;;  %917 = vmatpush.msra.mxu1 %v2931_v14 }
  0x48   :  { %522 = vmatpush.msra.mxu3 %v2937_v18  ;;  %900 = vmatpush.msra.mxu0 %v2946_v22 }
  0x49   :  { %503 = vmatpush.msra.mxu2 %v2939_v19  ;;  %918 = vmatpush.msra.mxu1 %v2937_v18 }
  0x4a   :  { %523 = vmatpush.msra.mxu3 %v2944_v21  ;;  %2371 = vmatmul.msk.f32.gmra.mxu0 %vm147_vm0, %v126_v17 }
  0x4b   :  { %504 = vmatpush.msra.mxu2 %v2946_v22  ;;  %919 = vmatpush.msra.mxu1 %v2944_v21 }
  0x4c   :  { %524 = vmatpush.msra.mxu3 %v2951_v24  ;;  %2379 = vmatmul.msk.f32.gmra.mxu1 %vm147_vm0, %v126_v17 }
  0x4d   :  { %920 = vmatpush.msra.mxu1 %v2951_v24 }
  0xa3   :  { %v189_v28 = vpop.f32.mrf.mxu0 }
  0xa4   :  { %v190_v29 = vadd.f32 %v189_v28, %v3025_v27 }
  0xa8   :  { %v230_v36 = vpop.f32.mrf.mxu1 }
  0xa9   :  { %v231_v37 = vadd.f32 %v230_v36, %v3028_v35 }
  0xaf   :  { %v309_v30 = vpop.f32.mrf.mxu2 }
  0xb0   :  { %v310_v31 = vadd.f32 %v309_v30, %v190_v29  ;;  %v329_v38 = vpop.f32.mrf.mxu3 }
  0xb1   :  { %v330_v40 = vadd.f32 %v329_v38, %v231_v37 }
  0xb2   :  { %v2386_v32 = vmul.f32 -1.442695, %v310_v31 }
  0xb3   :  { %v2387_v52 = vmul.f32 -1.442695, %v330_v40 }
  0xb4   :  { %2504 = vpow2.f32 %v2386_v32 }
  0xba   :  { %v2505_v33 = vpop.eup %2504 }
  0xbb   :  { %v335_v34 = vadd.f32 1.0, %v2505_v33 }
  0xbd   :  { %2506 = vrcp.f32 %v335_v34  ;;  %v347_v43 = vand.u32 2147483648, %v335_v34  ;;  %v345_v45 = vand.u32 2147483647, %v335_v34  ;;  %vm341_vm2 = vweird.f32 %v335_v34 }
  0xbe   :  { %2508 = vtanh.f32 %v330_v40 }
  0xbf   :  { %v348_v48 = vor.u32 1.1754944e-38, %v347_v43  ;;  %vm346_vm4 = vcmp.eq.f32.partialorder %v345_v45, 8.507059e+37  ;;  %2510 = vpow2.f32 %v2387_v52 }
  0xc3   :  { %v2507_v39 = vpop.eup %2506 }
  0xc4   :  { %v337_v41 = vmul.f32 %v2507_v39, %v335_v34  ;;  %vm342_vm1 = vweird.f32 %v2507_v39  ;;  %v2509_v47 = vpop.eup %2508 }
  0xc5   :  { %vm343_vm3 = vmor %vm341_vm2, %vm342_vm1  ;;  %v2511_v53 = vpop.eup %2510 }
  0xc6   :  { %v338_v42 = vsub.f32 1.0, %v337_v41  ;;  %v355_v54 = vadd.f32 1.0, %v2511_v53 }
  0xc7   :  { %v192_v23 = vpop.f32.mrf.mxu0 }
  0xc8   :  { %v339_v44 = vmul.f32 %v2507_v39, %v338_v42  ;;  %2512 = vrcp.f32 %v355_v54  ;;  %vm361_vm5 = vweird.f32 %v355_v54  ;;  %v367_v62 = vand.u32 2147483648, %v355_v54 }
  0xc9   :  { %v365_v5 = vand.u32 2147483647, %v355_v54  ;;  %v193_v26 = vadd.f32 %v192_v23, %v3025_v27  ;;  %v233_v33 = vpop.f32.mrf.mxu1 }
  0xca   :  { %v340_v46 = vadd.f32 %v2507_v39, %v339_v44  ;;  %v368_v7 = vor.u32 1.1754944e-38, %v367_v62  ;;  %v234_v34 = vadd.f32 %v233_v33, %v3028_v35 }
  0xcb   :  { %vm366_vm8 = vcmp.eq.f32.partialorder %v365_v5, 8.507059e+37 }
  0xcc   :  { %v344_v49 = vsel %vm343_vm3, %v2507_v39, %v340_v46 }
  0xcd   :  { %v349_v50 = vsel %vm346_vm4, %v348_v48, %v344_v49 }
  0xce   :  { %v372_v51 = vmul.f32 %v2509_v47, %v349_v50  ;;  %v2513_v55 = vpop.eup %2512  ;;  %v371_v59 = vmul.f32 0.0, %v349_v50 }
  0xcf   :  { %v357_v56 = vmul.f32 %v2513_v55, %v355_v54  ;;  %vm362_vm6 = vweird.f32 %v2513_v55 }
  0xd0   :  { %374 = vrot.lane.b32.xlu0 %v372_v51, %s2832_s4  ;;  %vm363_vm7 = vmor %vm361_vm5, %vm362_vm6 }
  0xd1   :  { %v358_v57 = vsub.f32 1.0, %v357_v56 }
  0xd3   :  { %v359_v58 = vmul.f32 %v2513_v55, %v358_v57 }
  0xd5   :  { %v360_v63 = vadd.f32 %v2513_v55, %v359_v58 }
  0xd7   :  { %v364_v9 = vsel %vm363_vm7, %v2513_v55, %v360_v63 }
  0xd8   :  { %v369_v13 = vsel %vm366_vm8, %v368_v7, %v364_v9 }
 0x142   :  { %v375_v60 = vpop.permute.xlu0 %374 }
 0x143   :  { %v3032_v61 = vadd.f32 %v375_v60, %v371_v59 }
 0x145   :  { %2514 = vtanh.f32 %v3032_v61 }
 0x14b   :  { %v2515_v12 = vpop.eup %2514 }
 0x14c   :  { %v379_v15 = vmul.f32 %v2515_v12, %v369_v13 }
 0x14e   :  { %381 = vrot.lane.b32.xlu0 %v379_v15, %s2832_s4 }
 0x1c0   :  { %v382_v20 = vpop.permute.xlu0 %381 }
 0x1c1   :  { %384 = vst.msk [vmem:[#allocation3] sm:$0xff] %vm288_vm9, %v382_v20  ;;  %2388 = vmatmul.msk.f32.vlgmr.msrb.gmra.mxu2 %vm288_vm9, %v382_v20  ;;  %2389 = vmatmul.msk.f32.vlgmr.msrb.gmra.mxu3 %vm288_vm9, %v382_v20 }
 0x1c2   :  { %596 = vmatpush.msrb.mxu2 %v2906_v0  ;;  %616 = vmatpush.msrb.mxu3 %v2911_v2 }
 0x1c4   :  { %597 = vmatpush.msrb.mxu2 %v2908_v1  ;;  %617 = vmatpush.msrb.mxu3 %v2916_v4 }
 0x1c6   :  { %598 = vmatpush.msrb.mxu2 %v2913_v3  ;;  %618 = vmatpush.msrb.mxu3 %v2919_v6 }
 0x1c8   :  { %599 = vmatpush.msrb.mxu2 %v2921_v8  ;;  %619 = vmatpush.msrb.mxu3 %v2925_v10 }
 0x1ca   :  { %600 = vmatpush.msrb.mxu2 %v2927_v11  ;;  %620 = vmatpush.msrb.mxu3 %v2931_v14 }
 0x1cc   :  { %601 = vmatpush.msrb.mxu2 %v2933_v16  ;;  %621 = vmatpush.msrb.mxu3 %v2937_v18 }
 0x1ce   :  { %602 = vmatpush.msrb.mxu2 %v2939_v19  ;;  %622 = vmatpush.msrb.mxu3 %v2944_v21 }
 0x1d0   :  { %603 = vmatpush.msrb.mxu2 %v2946_v22  ;;  %623 = vmatpush.msrb.mxu3 %v2951_v24 }
 0x244   :  { %v407_v28 = vpop.f32.mrf.mxu2  ;;  %v427_v36 = vpop.f32.mrf.mxu3 }
 0x245   :  { %v408_v29 = vadd.f32 %v407_v28, %v193_v26  ;;  %v428_v38 = vadd.f32 %v427_v36, %v234_v34 }
 0x247   :  { %v2390_v30 = vmul.f32 -1.442695, %v408_v29  ;;  %v2391_v50 = vmul.f32 -1.442695, %v428_v38 }
 0x249   :  { %2516 = vpow2.f32 %v2390_v30 }
 0x24f   :  { %v2517_v31 = vpop.eup %2516 }
 0x250   :  { %v433_v32 = vadd.f32 1.0, %v2517_v31 }
 0x252   :  { %2518 = vrcp.f32 %v433_v32  ;;  %v445_v41 = vand.u32 2147483648, %v433_v32  ;;  %v443_v43 = vand.u32 2147483647, %v433_v32  ;;  %vm439_vm11 = vweird.f32 %v433_v32 }
 0x253   :  { %2520 = vtanh.f32 %v428_v38 }
 0x254   :  { %v446_v45 = vor.u32 1.1754944e-38, %v445_v41  ;;  %vm444_vm13 = vcmp.eq.f32.partialorder %v443_v43, 8.507059e+37  ;;  %2522 = vpow2.f32 %v2391_v50 }
 0x258   :  { %v2519_v37 = vpop.eup %2518 }
 0x259   :  { %v435_v39 = vmul.f32 %v2519_v37, %v433_v32  ;;  %vm440_vm10 = vweird.f32 %v2519_v37  ;;  %v2521_v47 = vpop.eup %2520 }
 0x25a   :  { %vm441_vm12 = vmor %vm439_vm11, %vm440_vm10  ;;  %v2523_v51 = vpop.eup %2522 }
 0x25b   :  { %v436_v40 = vsub.f32 1.0, %v435_v39  ;;  %v453_v52 = vadd.f32 1.0, %v2523_v51 }
 0x25d   :  { %v437_v42 = vmul.f32 %v2519_v37, %v436_v40  ;;  %2524 = vrcp.f32 %v453_v52  ;;  %v465_v62 = vand.u32 2147483648, %v453_v52  ;;  %vm459_vm15 = vweird.f32 %v453_v52 }
 0x25e   :  { %v463_v63 = vand.u32 2147483647, %v453_v52 }
 0x25f   :  { %v438_v44 = vadd.f32 %v2519_v37, %v437_v42  ;;  %v466_v7 = vor.u32 1.1754944e-38, %v465_v62 }
 0x260   :  { %vm464_vm2 = vcmp.eq.f32.partialorder %v463_v63, 8.507059e+37 }
 0x261   :  { %v442_v46 = vsel %vm441_vm12, %v2519_v37, %v438_v44 }
 0x262   :  { %v447_v48 = vsel %vm444_vm13, %v446_v45, %v442_v46 }
 0x263   :  { %v470_v49 = vmul.f32 %v2521_v47, %v447_v48  ;;  %v2525_v53 = vpop.eup %2524  ;;  %v469_v57 = vmul.f32 %v447_v48, %v3032_v61  ;;  %v127_v61 = vld [vmem:[#allocation5 + $0x10] sm:$0xff] }
 0x264   :  { %v455_v54 = vmul.f32 %v2525_v53, %v453_v52  ;;  %vm460_vm14 = vweird.f32 %v2525_v53  ;;  %2372 = vmatmul.msk.f32.gmra.mxu0 %vm147_vm0, %v127_v61  ;;  %2380 = vmatmul.msk.f32.gmra.mxu1 %vm147_vm0, %v127_v61 }
 0x265   :  { %472 = vrot.lane.b32.xlu1 %v470_v49, %s2832_s4  ;;  %vm461_vm1 = vmor %vm459_vm15, %vm460_vm14 }
 0x266   :  { %v456_v55 = vsub.f32 1.0, %v455_v54 }
 0x268   :  { %v457_v56 = vmul.f32 %v2525_v53, %v456_v55 }
 0x26a   :  { %v458_v60 = vadd.f32 %v2525_v53, %v457_v56 }
 0x26c   :  { %v462_v5 = vsel %vm461_vm1, %v2525_v53, %v458_v60 }
 0x26d   :  { %v467_v12 = vsel %vm464_vm2, %v466_v7, %v462_v5 }
 0x2d7   :  { %v473_v58 = vpop.permute.xlu1 %472 }
 0x2d8   :  { %v3061_v59 = vadd.f32 %v473_v58, %v469_v57 }
 0x2da   :  { %2526 = vtanh.f32 %v3061_v59 }
 0x2e0   :  { %v2527_v9 = vpop.eup %2526 }
 0x2e1   :  { %v477_v13 = vmul.f32 %v2527_v9, %v467_v12  ;;  %v195_v17 = vpop.f32.mrf.mxu0  ;;  %v236_v31 = vpop.f32.mrf.mxu1 }
 0x2e2   :  { %v196_v20 = vadd.f32 %v195_v17, %v3025_v27  ;;  %v237_v32 = vadd.f32 %v236_v31, %v3028_v35 }
 0x2e3   :  { %479 = vrot.lane.b32.xlu1 %v477_v13, %s2832_s4 }
 0x355   :  { %v480_v15 = vpop.permute.xlu1 %479 }
 0x356   :  { %483 = vst.msk [vmem:[#allocation3 + $0x8] sm:$0xff] %vm288_vm9, %v480_v15  ;;  %2392 = vmatmul.msk.f32.vlgmr.msra.gmra.mxu2 %vm288_vm9, %v480_v15  ;;  %2393 = vmatmul.msk.f32.vlgmr.msra.gmra.mxu3 %vm288_vm9, %v480_v15 }
 0x357   :  { %794 = vmatpush.msra.mxu2 %v2906_v0  ;;  %814 = vmatpush.msra.mxu3 %v2911_v2 }
 0x359   :  { %795 = vmatpush.msra.mxu2 %v2908_v1  ;;  %815 = vmatpush.msra.mxu3 %v2916_v4 }
 0x35b   :  { %796 = vmatpush.msra.mxu2 %v2913_v3  ;;  %816 = vmatpush.msra.mxu3 %v2919_v6 }
 0x35d   :  { %797 = vmatpush.msra.mxu2 %v2921_v8  ;;  %817 = vmatpush.msra.mxu3 %v2925_v10 }
 0x35f   :  { %798 = vmatpush.msra.mxu2 %v2927_v11  ;;  %818 = vmatpush.msra.mxu3 %v2931_v14 }
 0x361   :  { %799 = vmatpush.msra.mxu2 %v2933_v16  ;;  %819 = vmatpush.msra.mxu3 %v2937_v18 }
 0x363   :  { %800 = vmatpush.msra.mxu2 %v2939_v19  ;;  %820 = vmatpush.msra.mxu3 %v2944_v21 }
 0x365   :  { %801 = vmatpush.msra.mxu2 %v2946_v22  ;;  %821 = vmatpush.msra.mxu3 %v2951_v24 }
 0x3d9   :  { %v506_v23 = vpop.f32.mrf.mxu2  ;;  %v526_v33 = vpop.f32.mrf.mxu3 }
 0x3da   :  { %v507_v26 = vadd.f32 %v506_v23, %v196_v20  ;;  %v527_v36 = vadd.f32 %v526_v33, %v237_v32  ;;  %v129_v32 = vld [vmem:[#allocation5 + $0x20] sm:$0xff]  ;;  %v130_v33 = vld [vmem:[#allocation5 + $0x28] sm:$0xff] }
 0x3dc   :  { %v2394_v28 = vmul.f32 -1.442695, %v507_v26  ;;  %v2395_v48 = vmul.f32 -1.442695, %v527_v36 }
 0x3de   :  { %2528 = vpow2.f32 %v2394_v28 }
 0x3e4   :  { %v2529_v29 = vpop.eup %2528 }
 0x3e5   :  { %v532_v30 = vadd.f32 1.0, %v2529_v29 }
 0x3e7   :  { %2530 = vrcp.f32 %v532_v30  ;;  %v544_v39 = vand.u32 2147483648, %v532_v30  ;;  %v542_v41 = vand.u32 2147483647, %v532_v30  ;;  %vm538_vm4 = vweird.f32 %v532_v30 }
 0x3e8   :  { %2532 = vtanh.f32 %v527_v36 }
 0x3e9   :  { %v545_v43 = vor.u32 1.1754944e-38, %v544_v39  ;;  %vm543_vm6 = vcmp.eq.f32.partialorder %v542_v41, 8.507059e+37  ;;  %2534 = vpow2.f32 %v2395_v48 }
 0x3ed   :  { %v2531_v34 = vpop.eup %2530 }
 0x3ee   :  { %v534_v37 = vmul.f32 %v2531_v34, %v532_v30  ;;  %vm539_vm3 = vweird.f32 %v2531_v34  ;;  %v2533_v45 = vpop.eup %2532 }
 0x3ef   :  { %vm540_vm5 = vmor %vm538_vm4, %vm539_vm3  ;;  %v2535_v49 = vpop.eup %2534 }
 0x3f0   :  { %v535_v38 = vsub.f32 1.0, %v534_v37  ;;  %v552_v50 = vadd.f32 1.0, %v2535_v49 }
 0x3f2   :  { %v536_v40 = vmul.f32 %v2531_v34, %v535_v38  ;;  %2536 = vrcp.f32 %v552_v50  ;;  %v564_v60 = vand.u32 2147483648, %v552_v50  ;;  %vm558_vm8 = vweird.f32 %v552_v50  ;;  %v131_v38 = vld [vmem:[#allocation5 + $0x30] sm:$0xff] }
 0x3f3   :  { %v562_v62 = vand.u32 2147483647, %v552_v50 }
 0x3f4   :  { %v537_v42 = vadd.f32 %v2531_v34, %v536_v40  ;;  %v565_v5 = vor.u32 1.1754944e-38, %v564_v60 }
 0x3f5   :  { %vm563_vm11 = vcmp.eq.f32.partialorder %v562_v62, 8.507059e+37 }
 0x3f6   :  { %v541_v44 = vsel %vm540_vm5, %v2531_v34, %v537_v42 }
 0x3f7   :  { %v546_v46 = vsel %vm543_vm6, %v545_v43, %v541_v44  ;;  %v132_v44 = vld [vmem:[#allocation5 + $0x38] sm:$0xff] }
 0x3f8   :  { %v569_v47 = vmul.f32 %v2533_v45, %v546_v46  ;;  %v2537_v51 = vpop.eup %2536  ;;  %v568_v55 = vmul.f32 %v546_v46, %v3061_v59  ;;  %v128_v59 = vld [vmem:[#allocation5 + $0x18] sm:$0xff] }
 0x3f9   :  { %v554_v52 = vmul.f32 %v2537_v51, %v552_v50  ;;  %vm559_vm7 = vweird.f32 %v2537_v51  ;;  %2373 = vmatmul.msk.f32.gmra.mxu0 %vm147_vm0, %v128_v59  ;;  %2381 = vmatmul.msk.f32.gmra.mxu1 %vm147_vm0, %v128_v59 }
 0x3fa   :  { %571 = vrot.lane.b32.xlu2 %v569_v47, %s2832_s4  ;;  %vm560_vm10 = vmor %vm558_vm8, %vm559_vm7 }
 0x3fb   :  { %v555_v53 = vsub.f32 1.0, %v554_v52 }
 0x3fd   :  { %v556_v54 = vmul.f32 %v2537_v51, %v555_v53 }
 0x3ff   :  { %v557_v58 = vadd.f32 %v2537_v51, %v556_v54 }
 0x401   :  { %v561_v63 = vsel %vm560_vm10, %v2537_v51, %v557_v58  ;;  %2374 = vmatmul.msk.f32.gmra.mxu0 %vm147_vm0, %v129_v32  ;;  %2382 = vmatmul.msk.f32.gmra.mxu1 %vm147_vm0, %v129_v32 }
 0x402   :  { %v566_v9 = vsel %vm563_vm11, %v565_v5, %v561_v63 }
 0x409   :  { %2375 = vmatmul.msk.f32.gmra.mxu0 %vm147_vm0, %v130_v33  ;;  %2383 = vmatmul.msk.f32.gmra.mxu1 %vm147_vm0, %v130_v33 }
 0x411   :  { %2376 = vmatmul.msk.f32.gmra.mxu0 %vm147_vm0, %v131_v38  ;;  %2384 = vmatmul.msk.f32.gmra.mxu1 %vm147_vm0, %v131_v38 }
 0x419   :  { %2377 = vmatmul.msk.f32.gmra.mxu0 %vm147_vm0, %v132_v44  ;;  %2385 = vmatmul.msk.f32.gmra.mxu1 %vm147_vm0, %v132_v44 }
 0x454   :  { %v572_v56 = vpop.permute.xlu2 %571 }
 0x455   :  { %v3090_v57 = vadd.f32 %v572_v56, %v568_v55 }
 0x457   :  { %2538 = vtanh.f32 %v3090_v57 }
 0x45d   :  { %v2539_v7 = vpop.eup %2538 }
 0x45e   :  { %v576_v12 = vmul.f32 %v2539_v7, %v566_v9 }
 0x460   :  { %578 = vrot.lane.b32.xlu2 %v576_v12, %s2832_s4 }
 0x4ba   :  { %v579_v13 = vpop.permute.xlu2 %578 }
 0x4bb   :  { %582 = vst.msk [vmem:[#allocation3 + $0x10] sm:$0xff] %vm288_vm9, %v579_v13  ;;  %2396 = vmatmul.msk.f32.vlgmr.msrb.gmra.mxu2 %vm288_vm9, %v579_v13  ;;  %2397 = vmatmul.msk.f32.vlgmr.msrb.gmra.mxu3 %vm288_vm9, %v579_v13 }
 0x4bc   :  { %992 = vmatpush.msrb.mxu2 %v2906_v0  ;;  %1012 = vmatpush.msrb.mxu3 %v2911_v2  ;;  %v198_v0 = vpop.f32.mrf.mxu0 }
 0x4be   :  { %993 = vmatpush.msrb.mxu2 %v2908_v1  ;;  %1013 = vmatpush.msrb.mxu3 %v2916_v4  ;;  %v199_v1 = vadd.f32 %v198_v0, %v3025_v27 }
 0x4c0   :  { %994 = vmatpush.msrb.mxu2 %v2913_v3  ;;  %1014 = vmatpush.msrb.mxu3 %v2919_v6 }
 0x4c2   :  { %995 = vmatpush.msrb.mxu2 %v2921_v8  ;;  %1015 = vmatpush.msrb.mxu3 %v2925_v10  ;;  %v239_v10 = vpop.f32.mrf.mxu1 }
 0x4c4   :  { %996 = vmatpush.msrb.mxu2 %v2927_v11  ;;  %1016 = vmatpush.msrb.mxu3 %v2931_v14  ;;  %v240_v11 = vadd.f32 %v239_v10, %v3028_v35  ;;  %v201_v53 = vpop.f32.mrf.mxu0 }
 0x4c5   :  { %v202_v62 = vadd.f32 %v201_v53, %v3025_v27 }
 0x4c6   :  { %997 = vmatpush.msrb.mxu2 %v2933_v16  ;;  %1017 = vmatpush.msrb.mxu3 %v2937_v18 }
 0x4c8   :  { %998 = vmatpush.msrb.mxu2 %v2939_v19  ;;  %1018 = vmatpush.msrb.mxu3 %v2944_v21 }
 0x4ca   :  { %999 = vmatpush.msrb.mxu2 %v2946_v22  ;;  %1019 = vmatpush.msrb.mxu3 %v2951_v24  ;;  %v242_v55 = vpop.f32.mrf.mxu1 }
 0x4cb   :  { %v243_v0 = vadd.f32 %v242_v55, %v3028_v35 }
 0x4cc   :  { %v3134_v54 = vpop.f32.mrf.mxu0 }
 0x4d4   :  { %v3136_v56 = vpop.f32.mrf.mxu0 }
 0x4dc   :  { %v3140_v58 = vpop.f32.mrf.mxu0 }
 0x53e   :  { %v605_v2 = vpop.f32.mrf.mxu2  ;;  %v625_v14 = vpop.f32.mrf.mxu3 }
 0x53f   :  { %v606_v3 = vadd.f32 %v605_v2, %v199_v1  ;;  %v626_v18 = vadd.f32 %v625_v14, %v240_v11 }
 0x541   :  { %v2398_v4 = vmul.f32 -1.442695, %v606_v3  ;;  %v2399_v29 = vmul.f32 -1.442695, %v626_v18 }
 0x543   :  { %2540 = vpow2.f32 %v2398_v4 }
 0x549   :  { %v2541_v6 = vpop.eup %2540 }
 0x54a   :  { %v631_v8 = vadd.f32 1.0, %v2541_v6 }
 0x54c   :  { %2542 = vrcp.f32 %v631_v8  ;;  %v643_v22 = vand.u32 2147483648, %v631_v8  ;;  %v641_v61 = vand.u32 2147483647, %v631_v8  ;;  %vm637_vm13 = vweird.f32 %v631_v8 }
 0x54d   :  { %2544 = vtanh.f32 %v626_v18 }
 0x54e   :  { %v644_v17 = vor.u32 1.1754944e-38, %v643_v22  ;;  %vm642_vm15 = vcmp.eq.f32.partialorder %v641_v61, 8.507059e+37  ;;  %2546 = vpow2.f32 %v2399_v29 }
 0x552   :  { %v2543_v16 = vpop.eup %2542 }
 0x553   :  { %v633_v19 = vmul.f32 %v2543_v16, %v631_v8  ;;  %vm638_vm12 = vweird.f32 %v2543_v16  ;;  %v2545_v23 = vpop.eup %2544 }
 0x554   :  { %vm639_vm14 = vmor %vm637_vm13, %vm638_vm12  ;;  %v2547_v30 = vpop.eup %2546 }
 0x555   :  { %v634_v21 = vsub.f32 1.0, %v633_v19  ;;  %v651_v31 = vadd.f32 1.0, %v2547_v30 }
 0x557   :  { %v635_v24 = vmul.f32 %v2543_v16, %v634_v21  ;;  %2548 = vrcp.f32 %v651_v31  ;;  %v663_v45 = vand.u32 2147483648, %v651_v31  ;;  %vm657_vm2 = vweird.f32 %v651_v31 }
 0x558   :  { %v661_v46 = vand.u32 2147483647, %v651_v31 }
 0x559   :  { %v636_v15 = vadd.f32 %v2543_v16, %v635_v24  ;;  %v664_v48 = vor.u32 1.1754944e-38, %v663_v45 }
 0x55a   :  { %vm662_vm4 = vcmp.eq.f32.partialorder %v661_v46, 8.507059e+37 }
 0x55b   :  { %v640_v20 = vsel %vm639_vm14, %v2543_v16, %v636_v15 }
 0x55c   :  { %v645_v26 = vsel %vm642_vm15, %v644_v17, %v640_v20 }
 0x55d   :  { %v668_v28 = vmul.f32 %v2545_v23, %v645_v26  ;;  %v2549_v34 = vpop.eup %2548  ;;  %v667_v40 = vmul.f32 %v645_v26, %v3090_v57  ;;  %v3138_v57 = vpop.f32.mrf.mxu1 }
 0x55e   :  { %v653_v36 = vmul.f32 %v2549_v34, %v651_v31  ;;  %vm658_vm1 = vweird.f32 %v2549_v34 }
 0x55f   :  { %670 = vrot.lane.b32.xlu0 %v668_v28, %s2832_s4  ;;  %vm659_vm3 = vmor %vm657_vm2, %vm658_vm1 }
 0x560   :  { %v654_v37 = vsub.f32 1.0, %v653_v36 }
 0x562   :  { %v655_v39 = vmul.f32 %v2549_v34, %v654_v37 }
 0x564   :  { %v656_v43 = vadd.f32 %v2549_v34, %v655_v39 }
 0x565   :  { %v3142_v60 = vpop.f32.mrf.mxu1 }
 0x566   :  { %v660_v47 = vsel %vm659_vm3, %v2549_v34, %v656_v43 }
 0x567   :  { %v665_v50 = vsel %vm662_vm4, %v664_v48, %v660_v47  ;;  %v246_v47 = vadd.f32 %v3138_v57, %v3028_v35 }
 0x56d   :  { %v3145_v9 = vpop.f32.mrf.mxu1 }
 0x5d1   :  { %v671_v41 = vpop.permute.xlu0 %670 }
 0x5d2   :  { %v3125_v42 = vadd.f32 %v671_v41, %v667_v40  ;;  %v205_v40 = vadd.f32 %v3134_v54, %v3025_v27 }
 0x5d4   :  { %2550 = vtanh.f32 %v3125_v42 }
 0x5da   :  { %v2551_v49 = vpop.eup %2550 }
 0x5db   :  { %v675_v51 = vmul.f32 %v2551_v49, %v665_v50 }
 0x5dd   :  { %677 = vrot.lane.b32.xlu1 %v675_v51, %s2832_s4 }
 0x64f   :  { %v678_v52 = vpop.permute.xlu1 %677 }
 0x650   :  { %681 = vst.msk [vmem:[#allocation3 + $0x18] sm:$0xff] %vm288_vm9, %v678_v52  ;;  %2400 = vmatmul.msk.f32.vlgmr.msrb.gmra.mxu0 %vm288_vm9, %v678_v52  ;;  %2401 = vmatmul.msk.f32.vlgmr.msrb.gmra.mxu1 %vm288_vm9, %v678_v52 }
 0x6cd   :  { %v704_v63 = vpop.f32.mrf.mxu0  ;;  %v724_v13 = vpop.f32.mrf.mxu1 }
 0x6ce   :  { %v705_v5 = vadd.f32 %v704_v63, %v202_v62  ;;  %v725_v2 = vadd.f32 %v724_v13, %v243_v0 }
 0x6d0   :  { %v2402_v7 = vmul.f32 -1.442695, %v705_v5  ;;  %v2403_v22 = vmul.f32 -1.442695, %v725_v2 }
 0x6d2   :  { %2552 = vpow2.f32 %v2402_v7 }
 0x6d8   :  { %v2553_v12 = vpop.eup %2552 }
 0x6d9   :  { %v730_v59 = vadd.f32 1.0, %v2553_v12 }
 0x6db   :  { %2554 = vrcp.f32 %v730_v59  ;;  %v742_v6 = vand.u32 2147483648, %v730_v59  ;;  %v740_v10 = vand.u32 2147483647, %v730_v59  ;;  %vm736_vm6 = vweird.f32 %v730_v59 }
 0x6dc   :  { %2556 = vtanh.f32 %v725_v2 }
 0x6dd   :  { %v743_v14 = vor.u32 1.1754944e-38, %v742_v6  ;;  %vm741_vm8 = vcmp.eq.f32.partialorder %v740_v10, 8.507059e+37  ;;  %2558 = vpow2.f32 %v2403_v22 }
 0x6e1   :  { %v2555_v1 = vpop.eup %2554 }
 0x6e2   :  { %v732_v3 = vmul.f32 %v2555_v1, %v730_v59  ;;  %vm737_vm5 = vweird.f32 %v2555_v1  ;;  %v2557_v18 = vpop.eup %2556 }
 0x6e3   :  { %vm738_vm7 = vmor %vm736_vm6, %vm737_vm5  ;;  %v2559_v24 = vpop.eup %2558 }
 0x6e4   :  { %v733_v4 = vsub.f32 1.0, %v732_v3  ;;  %v750_v61 = vadd.f32 1.0, %v2559_v24 }
 0x6e6   :  { %v734_v8 = vmul.f32 %v2555_v1, %v733_v4  ;;  %2560 = vrcp.f32 %v750_v61  ;;  %v762_v31 = vand.u32 2147483648, %v750_v61  ;;  %vm756_vm11 = vweird.f32 %v750_v61 }
 0x6e7   :  { %v760_v32 = vand.u32 2147483647, %v750_v61 }
 0x6e8   :  { %v735_v11 = vadd.f32 %v2555_v1, %v734_v8  ;;  %v763_v34 = vor.u32 1.1754944e-38, %v762_v31 }
 0x6e9   :  { %vm761_vm13 = vcmp.eq.f32.partialorder %v760_v32, 8.507059e+37 }
 0x6ea   :  { %v739_v16 = vsel %vm738_vm7, %v2555_v1, %v735_v11 }
 0x6eb   :  { %v744_v19 = vsel %vm741_vm8, %v743_v14, %v739_v16 }
 0x6ec   :  { %v767_v21 = vmul.f32 %v2557_v18, %v744_v19  ;;  %v2561_v15 = vpop.eup %2560  ;;  %v766_v26 = vmul.f32 %v744_v19, %v3125_v42 }
 0x6ed   :  { %v752_v17 = vmul.f32 %v2561_v15, %v750_v61  ;;  %vm757_vm10 = vweird.f32 %v2561_v15  ;;  %v208_v61 = vadd.f32 %v3136_v56, %v3025_v27 }
 0x6ee   :  { %769 = vrot.lane.b32.xlu2 %v767_v21, %s2832_s4  ;;  %vm758_vm12 = vmor %vm756_vm11, %vm757_vm10 }
 0x6ef   :  { %v753_v20 = vsub.f32 1.0, %v752_v17 }
 0x6f1   :  { %v754_v23 = vmul.f32 %v2561_v15, %v753_v20 }
 0x6f3   :  { %v755_v30 = vadd.f32 %v2561_v15, %v754_v23 }
 0x6f5   :  { %v759_v33 = vsel %vm758_vm12, %v2561_v15, %v755_v30 }
 0x6f6   :  { %v764_v37 = vsel %vm761_vm13, %v763_v34, %v759_v33 }
 0x748   :  { %v770_v28 = vpop.permute.xlu2 %769 }
 0x749   :  { %v772_v29 = vadd.f32 %v770_v28, %v766_v26 }
 0x74b   :  { %2562 = vtanh.f32 %v772_v29 }
 0x751   :  { %v2563_v36 = vpop.eup %2562 }
 0x752   :  { %v774_v38 = vmul.f32 %v2563_v36, %v764_v37 }
 0x754   :  { %776 = vrot.lane.b32.xlu0 %v774_v38, %s2832_s4 }
 0x7c6   :  { %v777_v39 = vpop.permute.xlu0 %776 }
 0x7c7   :  { %780 = vst.msk [vmem:[#allocation3 + $0x20] sm:$0xff] %vm288_vm9, %v777_v39  ;;  %2404 = vmatmul.msk.f32.vlgmr.msra.gmra.mxu2 %vm288_vm9, %v777_v39  ;;  %2405 = vmatmul.msk.f32.vlgmr.msra.gmra.mxu3 %vm288_vm9, %v777_v39 }
 0x84a   :  { %v803_v41 = vpop.f32.mrf.mxu2  ;;  %v823_v46 = vpop.f32.mrf.mxu3 }
 0x84b   :  { %v804_v42 = vadd.f32 %v803_v41, %v205_v40  ;;  %v824_v49 = vadd.f32 %v823_v46, %v246_v47 }
 0x84d   :  { %v2406_v43 = vmul.f32 -1.442695, %v804_v42  ;;  %v2407_v57 = vmul.f32 -1.442695, %v824_v49 }
 0x84f   :  { %2564 = vpow2.f32 %v2406_v43 }
 0x855   :  { %v2565_v44 = vpop.eup %2564 }
 0x856   :  { %v829_v45 = vadd.f32 1.0, %v2565_v44 }
 0x858   :  { %2566 = vrcp.f32 %v829_v45  ;;  %v841_v52 = vand.u32 2147483648, %v829_v45  ;;  %v839_v54 = vand.u32 2147483647, %v829_v45  ;;  %vm835_vm15 = vweird.f32 %v829_v45 }
 0x859   :  { %2568 = vtanh.f32 %v824_v49 }
 0x85a   :  { %v842_v62 = vor.u32 1.1754944e-38, %v841_v52  ;;  %vm840_vm2 = vcmp.eq.f32.partialorder %v839_v54, 8.507059e+37  ;;  %2570 = vpow2.f32 %v2407_v57  ;;  %v211_v57 = vadd.f32 %v3140_v58, %v3025_v27 }
 0x85e   :  { %v2567_v48 = vpop.eup %2566 }
 0x85f   :  { %v831_v50 = vmul.f32 %v2567_v48, %v829_v45  ;;  %vm836_vm14 = vweird.f32 %v2567_v48  ;;  %v2569_v5 = vpop.eup %2568 }
 0x860   :  { %vm837_vm1 = vmor %vm835_vm15, %vm836_vm14  ;;  %v2571_v59 = vpop.eup %2570 }
 0x861   :  { %v832_v51 = vsub.f32 1.0, %v831_v50  ;;  %v849_v13 = vadd.f32 1.0, %v2571_v59 }
 0x863   :  { %v833_v53 = vmul.f32 %v2567_v48, %v832_v51  ;;  %2572 = vrcp.f32 %v849_v13  ;;  %v861_v11 = vand.u32 2147483648, %v849_v13  ;;  %vm855_vm4 = vweird.f32 %v849_v13 }
 0x864   :  { %v859_v14 = vand.u32 2147483647, %v849_v13 }
 0x865   :  { %v834_v55 = vadd.f32 %v2567_v48, %v833_v53  ;;  %v862_v18 = vor.u32 1.1754944e-38, %v861_v11 }
 0x866   :  { %vm860_vm6 = vcmp.eq.f32.partialorder %v859_v14, 8.507059e+37 }
 0x867   :  { %v838_v63 = vsel %vm837_vm1, %v2567_v48, %v834_v55 }
 0x868   :  { %v843_v7 = vsel %vm840_vm2, %v842_v62, %v838_v63 }
 0x869   :  { %v866_v12 = vmul.f32 %v2569_v5, %v843_v7  ;;  %v2573_v0 = vpop.eup %2572  ;;  %v865_v4 = vmul.f32 %v843_v7, %v772_v29  ;;  %v249_v29 = vadd.f32 %v3142_v60, %v3028_v35 }
 0x86a   :  { %v851_v1 = vmul.f32 %v2573_v0, %v849_v13  ;;  %vm856_vm3 = vweird.f32 %v2573_v0 }
 0x86b   :  { %868 = vrot.lane.b32.xlu1 %v866_v12, %s2832_s4  ;;  %vm857_vm5 = vmor %vm855_vm4, %vm856_vm3 }
 0x86c   :  { %v852_v2 = vsub.f32 1.0, %v851_v1 }
 0x86e   :  { %v853_v3 = vmul.f32 %v2573_v0, %v852_v2 }
 0x870   :  { %v854_v10 = vadd.f32 %v2573_v0, %v853_v3 }
 0x872   :  { %v858_v16 = vsel %vm857_vm5, %v2573_v0, %v854_v10 }
 0x873   :  { %v863_v21 = vsel %vm860_vm6, %v862_v18, %v858_v16 }
 0x8dd   :  { %v869_v6 = vpop.permute.xlu1 %868 }
 0x8de   :  { %v871_v8 = vadd.f32 %v869_v6, %v865_v4  ;;  %v252_v4 = vadd.f32 %v3145_v9, %v3028_v35 }
 0x8e0   :  { %2574 = vtanh.f32 %v871_v8 }
 0x8e6   :  { %v2575_v19 = vpop.eup %2574 }
 0x8e7   :  { %v873_v22 = vmul.f32 %v2575_v19, %v863_v21 }
 0x8e9   :  { %875 = vrot.lane.b32.xlu2 %v873_v22, %s2832_s4 }
 0x943   :  { %v876_v24 = vpop.permute.xlu2 %875 }
 0x944   :  { %879 = vst.msk [vmem:[#allocation3 + $0x28] sm:$0xff] %vm288_vm9, %v876_v24  ;;  %2408 = vmatmul.msk.f32.vlgmr.msra.gmra.mxu0 %vm288_vm9, %v876_v24  ;;  %2409 = vmatmul.msk.f32.vlgmr.msra.gmra.mxu1 %vm288_vm9, %v876_v24 }
 0x9c1   :  { %v902_v15 = vpop.f32.mrf.mxu0  ;;  %v922_v28 = vpop.f32.mrf.mxu1 }
 0x9c2   :  { %v903_v17 = vadd.f32 %v902_v15, %v208_v61  ;;  %v923_v31 = vadd.f32 %v922_v28, %v249_v29 }
 0x9c4   :  { %v2410_v20 = vmul.f32 -1.442695, %v903_v17  ;;  %v2411_v60 = vmul.f32 -1.442695, %v923_v31 }
 0x9c6   :  { %2576 = vpow2.f32 %v2410_v20 }
 0x9cc   :  { %v2577_v23 = vpop.eup %2576 }
 0x9cd   :  { %v928_v26 = vadd.f32 1.0, %v2577_v23 }
 0x9cf   :  { %2578 = vrcp.f32 %v928_v26  ;;  %v940_v34 = vand.u32 2147483648, %v928_v26  ;;  %v938_v56 = vand.u32 2147483647, %v928_v26  ;;  %vm934_vm8 = vweird.f32 %v928_v26 }
 0x9d0   :  { %2580 = vtanh.f32 %v923_v31 }
 0x9d1   :  { %v941_v38 = vor.u32 1.1754944e-38, %v940_v34  ;;  %vm939_vm11 = vcmp.eq.f32.partialorder %v938_v56, 8.507059e+37  ;;  %2582 = vpow2.f32 %v2411_v60 }
 0x9d5   :  { %v2579_v30 = vpop.eup %2578 }
 0x9d6   :  { %v930_v32 = vmul.f32 %v2579_v30, %v928_v26  ;;  %vm935_vm7 = vweird.f32 %v2579_v30  ;;  %v2581_v40 = vpop.eup %2580 }
 0x9d7   :  { %vm936_vm10 = vmor %vm934_vm8, %vm935_vm7  ;;  %v2583_v43 = vpop.eup %2582 }
 0x9d8   :  { %v931_v33 = vsub.f32 1.0, %v930_v32  ;;  %v948_v44 = vadd.f32 1.0, %v2583_v43 }
 0x9da   :  { %v932_v36 = vmul.f32 %v2579_v30, %v931_v33  ;;  %2584 = vrcp.f32 %v948_v44  ;;  %v960_v53 = vand.u32 2147483648, %v948_v44  ;;  %vm954_vm13 = vweird.f32 %v948_v44 }
 0x9db   :  { %v958_v54 = vand.u32 2147483647, %v948_v44 }
 0x9dc   :  { %v933_v37 = vadd.f32 %v2579_v30, %v932_v36  ;;  %v961_v62 = vor.u32 1.1754944e-38, %v960_v53 }
 0x9dd   :  { %vm959_vm15 = vcmp.eq.f32.partialorder %v958_v54, 8.507059e+37 }
 0x9de   :  { %v937_v39 = vsel %vm936_vm10, %v2579_v30, %v933_v37 }
 0x9df   :  { %v942_v41 = vsel %vm939_vm11, %v941_v38, %v937_v39 }
 0x9e0   :  { %v965_v42 = vmul.f32 %v2581_v40, %v942_v41  ;;  %v2585_v45 = vpop.eup %2584  ;;  %v964_v49 = vmul.f32 %v942_v41, %v871_v8 }
 0x9e1   :  { %v950_v46 = vmul.f32 %v2585_v45, %v948_v44  ;;  %vm955_vm12 = vweird.f32 %v2585_v45 }
 0x9e2   :  { %967 = vrot.lane.b32.xlu0 %v965_v42, %s2832_s4  ;;  %vm956_vm14 = vmor %vm954_vm13, %vm955_vm12 }
 0x9e3   :  { %v951_v47 = vsub.f32 1.0, %v950_v46 }
 0x9e5   :  { %v952_v48 = vmul.f32 %v2585_v45, %v951_v47 }
 0x9e7   :  { %v953_v52 = vadd.f32 %v2585_v45, %v952_v48 }
 0x9e9   :  { %v957_v55 = vsel %vm956_vm14, %v2585_v45, %v953_v52 }
 0x9ea   :  { %v962_v5 = vsel %vm959_vm15, %v961_v62, %v957_v55 }
 0xa54   :  { %v968_v50 = vpop.permute.xlu0 %967 }
 0xa55   :  { %v970_v51 = vadd.f32 %v968_v50, %v964_v49 }
 0xa57   :  { %2586 = vtanh.f32 %v970_v51 }
 0xa5d   :  { %v2587_v63 = vpop.eup %2586 }
 0xa5e   :  { %v972_v7 = vmul.f32 %v2587_v63, %v962_v5 }
 0xa60   :  { %974 = vrot.lane.b32.xlu1 %v972_v7, %s2832_s4 }
 0xad2   :  { %v975_v12 = vpop.permute.xlu1 %974 }
 0xad3   :  { %978 = vst.msk [vmem:[#allocation3 + $0x30] sm:$0xff] %vm288_vm9, %v975_v12  ;;  %2412 = vmatmul.msk.f32.vlgmr.msrb.gmra.mxu2 %vm288_vm9, %v975_v12  ;;  %2413 = vmatmul.msk.f32.vlgmr.msrb.gmra.mxu3 %vm288_vm9, %v975_v12 }
 0xb56   :  { %v1001_v59 = vpop.f32.mrf.mxu2  ;;  %v1021_v3 = vpop.f32.mrf.mxu3 }
 0xb57   :  { %v1002_v13 = vadd.f32 %v1001_v59, %v211_v57  ;;  %v1022_v8 = vadd.f32 %v1021_v3, %v252_v4 }
 0xb59   :  { %v2414_v0 = vmul.f32 -1.442695, %v1002_v13  ;;  %v2415_v35 = vmul.f32 -1.442695, %v1022_v8 }
 0xb5b   :  { %2588 = vpow2.f32 %v2414_v0 }
 0xb61   :  { %v2589_v1 = vpop.eup %2588 }
 0xb62   :  { %v1027_v2 = vadd.f32 1.0, %v2589_v1 }
 0xb64   :  { %2590 = vrcp.f32 %v1027_v2  ;;  %v1039_v14 = vand.u32 2147483648, %v1027_v2  ;;  %v1037_v27 = vand.u32 2147483647, %v1027_v2  ;;  %vm1033_vm2 = vweird.f32 %v1027_v2 }
 0xb65   :  { %2592 = vtanh.f32 %v1022_v8 }
 0xb66   :  { %v1040_v18 = vor.u32 1.1754944e-38, %v1039_v14  ;;  %vm1038_vm4 = vcmp.eq.f32.partialorder %v1037_v27, 8.507059e+37  ;;  %2594 = vpow2.f32 %v2415_v35 }
 0xb6a   :  { %v2591_v6 = vpop.eup %2590 }
 0xb6b   :  { %v1029_v10 = vmul.f32 %v2591_v6, %v1027_v2  ;;  %vm1034_vm1 = vweird.f32 %v2591_v6  ;;  %v2593_v21 = vpop.eup %2592 }
 0xb6c   :  { %vm1035_vm3 = vmor %vm1033_vm2, %vm1034_vm1  ;;  %v2595_v9 = vpop.eup %2594 }
 0xb6d   :  { %v1030_v11 = vsub.f32 1.0, %v1029_v10  ;;  %v1047_v61 = vadd.f32 1.0, %v2595_v9 }
 0xb6f   :  { %v1031_v16 = vmul.f32 %v2591_v6, %v1030_v11  ;;  %2596 = vrcp.f32 %v1047_v61  ;;  %v1059_v31 = vand.u32 2147483648, %v1047_v61  ;;  %vm1053_vm6 = vweird.f32 %v1047_v61 }
 0xb70   :  { %v1057_v32 = vand.u32 2147483647, %v1047_v61 }
 0xb71   :  { %v1032_v58 = vadd.f32 %v2591_v6, %v1031_v16  ;;  %v1060_v34 = vor.u32 1.1754944e-38, %v1059_v31 }
 0xb72   :  { %vm1058_vm8 = vcmp.eq.f32.partialorder %v1057_v32, 8.507059e+37 }
 0xb73   :  { %v1036_v19 = vsel %vm1035_vm3, %v2591_v6, %v1032_v58 }
 0xb74   :  { %v1041_v22 = vsel %vm1038_vm4, %v1040_v18, %v1036_v19 }
 0xb75   :  { %v1064_v24 = vmul.f32 %v2593_v21, %v1041_v22  ;;  %v2597_v15 = vpop.eup %2596  ;;  %v1063_v26 = vmul.f32 %v1041_v22, %v970_v51 }
 0xb76   :  { %v1049_v17 = vmul.f32 %v2597_v15, %v1047_v61  ;;  %vm1054_vm5 = vweird.f32 %v2597_v15 }
 0xb77   :  { %1066 = vrot.lane.b32.xlu2 %v1064_v24, %s2832_s4  ;;  %vm1055_vm7 = vmor %vm1053_vm6, %vm1054_vm5 }
 0xb78   :  { %v1050_v20 = vsub.f32 1.0, %v1049_v17 }
 0xb7a   :  { %v1051_v23 = vmul.f32 %v2597_v15, %v1050_v20 }
 0xb7c   :  { %v1052_v30 = vadd.f32 %v2597_v15, %v1051_v23 }
 0xb7e   :  { %v1056_v33 = vsel %vm1055_vm7, %v2597_v15, %v1052_v30 }
 0xb7f   :  { %v1061_v56 = vsel %vm1058_vm8, %v1060_v34, %v1056_v33 }
 0xbd1   :  { %v1067_v28 = vpop.permute.xlu2 %1066 }
 0xbd2   :  { %v1069_v29 = vadd.f32 %v1067_v28, %v1063_v26 }
 0xbd4   :  { %2598 = vtanh.f32 %v1069_v29 }
 0xbda   :  { %v2599_v36 = vpop.eup %2598 }
 0xbdb   :  { %v1071_v37 = vmul.f32 %v2599_v36, %v1061_v56 }
 0xbdd   :  { %1073 = vrot.lane.b32.xlu0 %v1071_v37, %s2832_s4 }
 0xc4f   :  { %v1074_v38 = vpop.permute.xlu0 %1073 }
 0xc50   :  { %1077 = vst.msk [vmem:[#allocation3 + $0x38] sm:$0xff] %vm288_vm9, %v1074_v38 }
 0xc51 LB: > { %s1084_s19 = ssub.s32 7, %s2819_s18  ;;  %s2833_s1 = smov 96   ;;  %s2819_s18 = sphi %s2817_s18, %s1083_s18  }
 0xc52   : > { %s2416_s20 = sshll.u32 %s1084_s19, 3  ;;  %s2417_s22 = sshll.u32 %s2819_s18, 3 }
 0xc53   : > { %s1086_s21 = scalar_lea.vmem [#allocation3], %s2416_s20  ;;  %s1093_s23 = scalar_lea.vmem [#allocation4], %s2417_s22 }
 0xc54   : > { %s1083_s18 = sadd.s32 1, %s2819_s18  }
 0xc55   : > { %p1080_p0 = scmp.ge.s32.totalorder %s1083_s18, 8  }
 0xc56   :  { %v1125_v41 = vld [vmem:[#allocation13 + $0x70] sm:$0xff] (%p1080_p0)  ;;  %v1123_v60 = vld [vmem:[#allocation13 + $0x60] sm:$0xff] (%p1080_p0)  ;;  %v1095_v49 = vld [vmem:[#allocation3] sm:$0xff] (%p1080_p0)  ;;  %v2834_v33 = vmov (%p1080_p0), 1983009808   ;;  %vm1362_vm10 = vcmask (%p1080_p0), 1047556  }
 0xc57   : > { %v1087_v39 = vld [vmem:[%s1086_s21] sm:$0xff]  ;;  %v1117_v42 = vld [vmem:[#allocation13 + $0x30] sm:$0xff] (%p1080_p0)  ;;  %1163 = vmatpush.msrb.mxu0 (%p1080_p0), %v1125_v41  ;;  %v1115_v43 = vld [vmem:[#allocation13 + $0x20] sm:$0xff] (%p1080_p0)  ;;  %v1367_v34 = vunpack.c.l.s4 (%p1080_p0), %v2834_v33  ;;  %vm1829_vm11 = vcmask (%p1080_p0), 64512   ;;  %s2837_s27 = smov (%p1080_p0), [#allocation16]   ;;  %s2348_s30 = sshll.u32 (%p1080_p0), %s3595_s9, 4  ;;  %s2349_s30 = int_to_ptr.hbm [resolvable:$true] %s2348_s30 }
 0xc58   : > { %1089 = vrot.lane.b32.xlu0 %v1087_v39, %s2833_s1  ;;  %1269 = vmatpush.msra.mxu2 (%p1080_p0), %v1117_v42  ;;  %v1121_v44 = vld [vmem:[#allocation13 + $0x50] sm:$0xff] (%p1080_p0)  ;;  %v1119_v46 = vld [vmem:[#allocation13 + $0x40] sm:$0xff] (%p1080_p0)  ;;  %v3192_v53 = vld [vmem:[#allocation3 + $0x10] sm:$0xff] (%p1080_p0)  ;;  %s2346_s3 = sshll.u32 (%p1080_p0), %s2837_s27, 4  ;;  %s2347_s3 = int_to_ptr.vmem [resolvable:$true] %s2346_s3 }
 0xc59   :  { %v1113_v45 = vld [vmem:[#allocation13 + $0x10] sm:$0xff] (%p1080_p0)  ;;  %2475 = vmatpush.msra.mxu3 (%p1080_p0), %v1117_v42  ;;  %1164 = vmatpush.msrb.mxu0 (%p1080_p0), %v1123_v60  ;;  %v1111_v47 = vld [vmem:[#allocation13] sm:$0xff] (%p1080_p0)  ;;  %v3212_v5 = vld [vmem:[#allocation3 + $0x20] sm:$0xff] (%p1080_p0)  ;;  %v3254_v42 = vunpack.c.0.s8 (%p1080_p0), %v1367_v34 }
 0xc5a   :  { %1270 = vmatpush.msra.mxu2 (%p1080_p0), %v1115_v43  ;;  %v1096_v51 = vld [vmem:[#allocation3 + $0x8] sm:$0xff] (%p1080_p0)  ;;  %v3198_v54 = vld [vmem:[#allocation3 + $0x38] sm:$0xff] (%p1080_p0)  ;;  %v3228_v59 = vld [vmem:[#allocation3 + $0x30] sm:$0xff] (%p1080_p0) }
 0xc5b   :  { %2476 = vmatpush.msra.mxu3 (%p1080_p0), %v1115_v43  ;;  %1165 = vmatpush.msrb.mxu0 (%p1080_p0), %v1121_v44  ;;  %v3204_v62 = vld [vmem:[#allocation3 + $0x18] sm:$0xff] (%p1080_p0)  ;;  %v3220_v12 = vld [vmem:[#allocation3 + $0x28] sm:$0xff] (%p1080_p0)  ;;  %v1118_v10 = vld [vmem:[#allocation13 + $0x38] sm:$0xff] (%p1080_p0) }
 0xc5c   :  { %1271 = vmatpush.msra.mxu2 (%p1080_p0), %v1113_v45  ;;  %v1116_v14 = vld [vmem:[#allocation13 + $0x28] sm:$0xff] (%p1080_p0)  ;;  %v1114_v27 = vld [vmem:[#allocation13 + $0x18] sm:$0xff] (%p1080_p0) }
 0xc5d   :  { %2477 = vmatpush.msra.mxu3 (%p1080_p0), %v1113_v45  ;;  %1166 = vmatpush.msrb.mxu0 (%p1080_p0), %v1119_v46  ;;  %v1126_v58 = vld [vmem:[#allocation13 + $0x78] sm:$0xff] (%p1080_p0)  ;;  %v1112_v18 = vld [vmem:[#allocation13 + $0x8] sm:$0xff] (%p1080_p0) }
 0xc5e   :  { %1272 = vmatpush.msra.mxu2 (%p1080_p0), %v1111_v47  ;;  %1204 = vmatpush.msrb.mxu1 (%p1080_p0), %v1126_v58  ;;  %v1124_v19 = vld [vmem:[#allocation13 + $0x68] sm:$0xff] (%p1080_p0)  ;;  %v1122_v22 = vld [vmem:[#allocation13 + $0x58] sm:$0xff] (%p1080_p0) }
 0xc5f   :  { %2434 = vmatmul.msk.f32.vlgmr.msra.gmra.mxu2 (%p1080_p0), %vm147_vm0, %v1095_v49  ;;  %2478 = vmatpush.msra.mxu3 (%p1080_p0), %v1111_v47  ;;  %v3242_v35 = vld [vmem:[%s3592_s6] sm:$0x3] (%p1080_p0)  ;;  %v1120_v9 = vld [vmem:[#allocation13 + $0x48] sm:$0xff] (%p1080_p0) }
 0xc60   :  { %2441 = vmatmul.msk.f32.vlgmr.msra.gmra.mxu3 (%p1080_p0), %vm147_vm0, %v3198_v54  ;;  %1205 = vmatpush.msrb.mxu1 (%p1080_p0), %v1124_v19  ;;  %v1341_v20 = vperm.slane (%p1080_p0), %v3242_v35, 0 }
 0xc61   :  { %1310 = vmatpush.msrb.mxu3 (%p1080_p0), %v1118_v10 }
 0xc62   :  { %1206 = vmatpush.msrb.mxu1 (%p1080_p0), %v1122_v22 }
 0xc63   :  { %1311 = vmatpush.msrb.mxu3 (%p1080_p0), %v1116_v14 }
 0xc64   :  { %1207 = vmatpush.msrb.mxu1 (%p1080_p0), %v1120_v9 }
 0xc65   :  { %1312 = vmatpush.msrb.mxu3 (%p1080_p0), %v1114_v27 }
 0xc67   :  { %2435 = vmatmul.msk.f32.gmra.mxu2 (%p1080_p0), %vm147_vm0, %v1096_v51  ;;  %1313 = vmatpush.msrb.mxu3 (%p1080_p0), %v1112_v18 }
 0xc68   :  { %2442 = vmatmul.msk.f32.vlgmr.msrb.gmra.mxu3 (%p1080_p0), %vm147_vm0, %v1095_v49 }
 0xc6f   :  { %2436 = vmatmul.msk.f32.gmra.mxu2 (%p1080_p0), %vm147_vm0, %v3192_v53 }
 0xc70   :  { %2443 = vmatmul.msk.f32.gmra.mxu3 (%p1080_p0), %vm147_vm0, %v1096_v51 }
 0xc77   :  { %2437 = vmatmul.msk.f32.gmra.mxu2 (%p1080_p0), %vm147_vm0, %v3204_v62 }
 0xc78   :  { %2444 = vmatmul.msk.f32.gmra.mxu3 (%p1080_p0), %vm147_vm0, %v3192_v53 }
 0xc7f   :  { %2438 = vmatmul.msk.f32.gmra.mxu2 (%p1080_p0), %vm147_vm0, %v3212_v5 }
 0xc80   :  { %2445 = vmatmul.msk.f32.gmra.mxu3 (%p1080_p0), %vm147_vm0, %v3204_v62 }
 0xc87   :  { %2439 = vmatmul.msk.f32.gmra.mxu2 (%p1080_p0), %vm147_vm0, %v3220_v12 }
 0xc88   :  { %2446 = vmatmul.msk.f32.gmra.mxu3 (%p1080_p0), %vm147_vm0, %v3212_v5 }
 0xc8f   :  { %2440 = vmatmul.msk.f32.gmra.mxu2 (%p1080_p0), %vm147_vm0, %v3228_v59 }
 0xc90   :  { %2447 = vmatmul.msk.f32.gmra.mxu3 (%p1080_p0), %vm147_vm0, %v3220_v12 }
 0xc98   :  { %2448 = vmatmul.msk.f32.gmra.mxu3 (%p1080_p0), %vm147_vm0, %v3228_v59 }
 0xca0   :  { %2449 = vmatmul.msk.f32.gmra.mxu3 (%p1080_p0), %vm147_vm0, %v3198_v54 }
 0xcc7   :  { %1082 = sbr.rel (!%p1080_p0) target bundleno = 3153 (0xc51), region = 103 }
 0xcca   : > { %v1090_v40 = vpop.permute.xlu0 %1089 }
 0xccb   : > { %1094 = vst.msk [vmem:[%s1093_s23] sm:$0xff] %vm147_vm0, %v1090_v40 }
 0xcd2   :  { %v3180_v48 = vld [vmem:[#allocation4] sm:$0xff]  ;;  %v3185_v50 = vld [vmem:[#allocation4 + $0x8] sm:$0xff]  ;;  %v3190_v52 = vld [vmem:[#allocation4 + $0x10] sm:$0xff] }
 0xcd3   :  { %2418 = vmatmul.msk.f32.vlgmr.msrb.gmra.mxu0 %vm147_vm0, %v3180_v48  ;;  %v3202_v55 = vld [vmem:[#allocation4 + $0x18] sm:$0xff]  ;;  %v3210_v63 = vld [vmem:[#allocation4 + $0x20] sm:$0xff]  ;;  %v3218_v7 = vld [vmem:[#allocation4 + $0x28] sm:$0xff]  ;;  %2426 = vmatmul.msk.f32.vlgmr.msrb.gmra.mxu1 %vm147_vm0, %v3180_v48 }
 0xcd4   :  { %v3226_v57 = vld [vmem:[#allocation4 + $0x30] sm:$0xff]  ;;  %v3234_v13 = vld [vmem:[#allocation4 + $0x38] sm:$0xff] }
 0xcdb   :  { %2419 = vmatmul.msk.f32.gmra.mxu0 %vm147_vm0, %v3185_v50  ;;  %2427 = vmatmul.msk.f32.gmra.mxu1 %vm147_vm0, %v3185_v50 }
 0xce2   :  { %v1274_v1 = vpop.f32.mrf.mxu2 }
 0xce3   :  { %2420 = vmatmul.msk.f32.gmra.mxu0 %vm147_vm0, %v3190_v52  ;;  %v1295_v43 = vpop.f32.mrf.mxu3  ;;  %2428 = vmatmul.msk.f32.gmra.mxu1 %vm147_vm0, %v3190_v52 }
 0xcea   :  { %v1277_v3 = vpop.f32.mrf.mxu2 }
 0xceb   :  { %2421 = vmatmul.msk.f32.gmra.mxu0 %vm147_vm0, %v3202_v55  ;;  %2429 = vmatmul.msk.f32.gmra.mxu1 %vm147_vm0, %v3202_v55 }
 0xcf2   :  { %v1280_v6 = vpop.f32.mrf.mxu2 }
 0xcf3   :  { %2422 = vmatmul.msk.f32.gmra.mxu0 %vm147_vm0, %v3210_v63  ;;  %2430 = vmatmul.msk.f32.gmra.mxu1 %vm147_vm0, %v3210_v63 }
 0xcfa   :  { %v1283_v11 = vpop.f32.mrf.mxu2 }
 0xcfb   :  { %2423 = vmatmul.msk.f32.gmra.mxu0 %vm147_vm0, %v3218_v7  ;;  %2431 = vmatmul.msk.f32.gmra.mxu1 %vm147_vm0, %v3218_v7 }
 0xd02   :  { %v1286_v21 = vpop.f32.mrf.mxu2 }
 0xd03   :  { %2424 = vmatmul.msk.f32.gmra.mxu0 %vm147_vm0, %v3226_v57  ;;  %2432 = vmatmul.msk.f32.gmra.mxu1 %vm147_vm0, %v3226_v57 }
 0xd0a   :  { %v1289_v26 = vpop.f32.mrf.mxu2 }
 0xd0b   :  { %2425 = vmatmul.msk.f32.gmra.mxu0 %vm147_vm0, %v3234_v13  ;;  %2433 = vmatmul.msk.f32.gmra.mxu1 %vm147_vm0, %v3234_v13 }
 0xd12   :  { %v1292_v60 = vpop.f32.mrf.mxu2 }
 0xd50   :  { %v1168_v0 = vpop.f32.mrf.mxu0  ;;  %v1209_v7 = vpop.f32.mrf.mxu1 }
 0xd51   :  { %v1275_v30 = vadd.f32 %v1274_v1, %v1168_v0 }
 0xd53   :  { %v1345_v39 = vadd.f32 %v1341_v20, %v1275_v30 }
 0xd55   :  { %v1364_v0 = vrot.slane %v1345_v39, 4 }
 0xd58   :  { %v1171_v2 = vpop.f32.mrf.mxu0  ;;  %v1212_v59 = vpop.f32.mrf.mxu1 }
 0xd59   :  { %v1278_v15 = vadd.f32 %v1277_v3, %v1171_v2 }
 0xd5b   :  { %v1347_v28 = vadd.f32 %v1341_v20, %v1278_v15 }
 0xd5d   :  { %v1376_v36 = vrot.slane %v1347_v28, 4 }
 0xd60   :  { %v1174_v4 = vpop.f32.mrf.mxu0 }
 0xd61   :  { %v1281_v61 = vadd.f32 %v1280_v6, %v1174_v4 }
 0xd63   :  { %v1349_v23 = vadd.f32 %v1341_v20, %v1281_v61 }
 0xd65   :  { %v1361_v32 = vrot.slane %v1349_v23, 4 }
 0xd67   :  { %v1363_v41 = vsel %vm1362_vm10, %v1361_v32, %v1345_v39 }
 0xd68   :  { %v1177_v8 = vpop.f32.mrf.mxu0  ;;  %v1369_v53 = vperm.slane %v1363_v41, %v3254_v42 }
 0xd69   :  { %v1284_v17 = vadd.f32 %v1283_v11, %v1177_v8  ;;  %v1365_v8 = vsel %vm1362_vm10, %v1349_v23, %v1364_v0  ;;  %v2835_v11 = vmov 1934713408  }
 0xd6a   :  { %v1415_v14 = vunpack.c.l.s4 %v2835_v11 }
 0xd6b   :  { %v1351_v29 = vadd.f32 %v1341_v20, %v1284_v17 }
 0xd6c   :  { %v3277_v23 = vunpack.c.0.s8 %v1415_v14 }
 0xd6d   :  { %v1374_v56 = vrot.slane %v1351_v29, 4  ;;  %v1377_v40 = vsel %vm1362_vm10, %v1351_v29, %v1376_v36 }
 0xd6e   :  { %v3258_v48 = vperm.slane %v1377_v40, %v3254_v42 }
 0xd6f   :  { %v1375_v44 = vsel %vm1362_vm10, %v1374_v56, %v1347_v28 }
 0xd70   :  { %v1180_v16 = vpop.f32.mrf.mxu0  ;;  %v1381_v1 = vperm.slane %v1375_v44, %v3254_v42  ;;  %v1422_v10 = vrot.slane %v3258_v48, 4 }
 0xd71   :  { %v1287_v37 = vadd.f32 %v1286_v21, %v1180_v16  ;;  %v1373_v21 = vperm.slane %v1365_v8, %v3254_v42  ;;  %v1215_v8 = vpop.f32.mrf.mxu1 }
 0xd72   :  { %v1410_v9 = vrot.slane %v1381_v1, 4 }
 0xd73   :  { %v1353_v45 = vadd.f32 %v1341_v20, %v1287_v37  ;;  %v1423_v62 = vsel %vm1362_vm10, %v1422_v10, %v1373_v21  ;;  %v1424_v5 = vrot.slane %v1373_v21, 4 }
 0xd74   :  { %v1429_v33 = vperm.slane %v1423_v62, %v3277_v23  ;;  %v1411_v34 = vsel %vm1362_vm10, %v1410_v9, %v1369_v53 }
 0xd75   :  { %v1388_v2 = vrot.slane %v1353_v45, 4  ;;  %v1417_v55 = vperm.slane %v1411_v34, %v3277_v23 }
 0xd77   :  { %v1460_v0 = vrot.slane %v1417_v55, 4 }
 0xd78   :  { %v1183_v24 = vpop.f32.mrf.mxu0 }
 0xd79   :  { %v1290_v38 = vadd.f32 %v1289_v26, %v1183_v24  ;;  %v1412_v24 = vrot.slane %v1369_v53, 4  ;;  %v1218_v54 = vpop.f32.mrf.mxu1 }
 0xd7b   :  { %v1355_v46 = vadd.f32 %v1341_v20, %v1290_v38  ;;  %v1413_v29 = vsel %vm1362_vm10, %v1381_v1, %v1412_v24 }
 0xd7c   :  { %v1421_v37 = vperm.slane %v1413_v29, %v3277_v23 }
 0xd7d   :  { %v1400_v3 = vrot.slane %v1355_v46, 4 }
 0xd80   :  { %v1186_v31 = vpop.f32.mrf.mxu0 }
 0xd81   :  { %v1293_v47 = vadd.f32 %v1292_v60, %v1186_v31 }
 0xd83   :  { %v1357_v50 = vadd.f32 %v1341_v20, %v1293_v47  ;;  %v1425_v47 = vsel %vm1362_vm10, %v3258_v48, %v1424_v5 }
 0xd84   :  { %v1433_v53 = vperm.slane %v1425_v47, %v3277_v23 }
 0xd85   :  { %v1386_v4 = vrot.slane %v1357_v50, 4  ;;  %v1389_v27 = vsel %vm1362_vm10, %v1357_v50, %v1388_v2 }
 0xd86   :  { %v1397_v61 = vperm.slane %v1389_v27, %v3254_v42  ;;  %v1472_v48 = vrot.slane %v1433_v53, 4 }
 0xd87   :  { %v1387_v16 = vsel %vm1362_vm10, %v1386_v4, %v1353_v45  ;;  %v1468_v45 = vrot.slane %v1429_v33, 4  ;;  %v1315_v4 = vpop.f32.mrf.mxu3 }
 0xd88   :  { %v1189_v49 = vpop.f32.mrf.mxu0  ;;  %v1393_v19 = vperm.slane %v1387_v16, %v3254_v42  ;;  %v1448_v44 = vrot.slane %v1397_v61, 4 }
 0xd89   :  { %v1296_v51 = vadd.f32 %v1295_v43, %v1189_v49 }
 0xd8a   :  { %v1436_v15 = vrot.slane %v1393_v19, 4 }
 0xd8b   :  { %v1359_v6 = vadd.f32 %v1341_v20, %v1296_v51 }
 0xd8d   :  { %v1398_v58 = vrot.slane %v1359_v6, 4  ;;  %v1401_v18 = vsel %vm1362_vm10, %v1359_v6, %v1400_v3 }
 0xd8e   :  { %v1409_v52 = vperm.slane %v1401_v18, %v3254_v42  ;;  %v1221_v18 = vpop.f32.mrf.mxu1 }
 0xd8f   :  { %v1399_v22 = vsel %vm1362_vm10, %v1398_v58, %v1355_v46  ;;  %v1464_v46 = vrot.slane %v1421_v37, 4  ;;  %v1318_v6 = vpop.f32.mrf.mxu3 }
 0xd90   :  { %v1405_v17 = vperm.slane %v1399_v22, %v3254_v42  ;;  %v1446_v20 = vrot.slane %v1409_v52, 4  ;;  %v1449_v49 = vsel %vm1362_vm10, %v1409_v52, %v1448_v44  ;;  %v1319_v62 = vadd.f32 %v1318_v6, %v1212_v59 }
 0xd91   :  { %v1457_v12 = vperm.slane %v1449_v49, %v3277_v23 }
 0xd92   :  { %v1434_v26 = vrot.slane %v1405_v17, 4  ;;  %v1447_v28 = vsel %vm1362_vm10, %v1446_v20, %v1397_v61  ;;  %v1437_v30 = vsel %vm1362_vm10, %v1405_v17, %v1436_v15  ;;  %v1342_v61 = vperm.slane %v3242_v35, 1 }
 0xd93   :  { %v1453_v31 = vperm.slane %v1447_v28, %v3277_v23  ;;  %v1445_v32 = vperm.slane %v1437_v30, %v3277_v23  ;;  %v1470_v1 = vrot.slane %v1457_v12, 4  ;;  %v1473_v2 = vsel %vm1362_vm10, %v1457_v12, %v1472_v48 }
 0xd94   :  { %v1435_v36 = vsel %vm1362_vm10, %v1434_v26, %v1393_v19  ;;  %v1316_v30 = vadd.f32 %v1315_v4, %v1209_v7  ;;  %v1348_v34 = vadd.f32 %v1342_v61, %v1319_v62 }
 0xd95   :  { %v1466_v56 = vrot.slane %v1453_v31, 4  ;;  %v1462_v38 = vrot.slane %v1445_v32, 4  ;;  %v1441_v39 = vperm.slane %v1435_v36, %v3277_v23  ;;  %v1469_v50 = vsel %vm1362_vm10, %v1453_v31, %v1468_v45 }
 0xd96   :  { %v1465_v51 = vsel %vm1362_vm10, %v1445_v32, %v1464_v46  ;;  %v1471_v3 = vsel %vm1362_vm10, %v1470_v1, %v1433_v53  ;;  %v1224_v22 = vpop.f32.mrf.mxu1 }
 0xd97   :  { %v1467_v40 = vsel %vm1362_vm10, %v1466_v56, %v1429_v33  ;;  %v1463_v41 = vsel %vm1362_vm10, %v1462_v38, %v1421_v37  ;;  %v1458_v60 = vrot.slane %v1441_v39, 4  ;;  %v1461_v63 = vsel %vm1362_vm10, %v1441_v39, %v1460_v0  ;;  %v1321_v10 = vpop.f32.mrf.mxu3 }
 0xd98   :  { %1722 = vrot.lane.b32.xlu1 %v1467_v40, %s2832_s4  ;;  %1668 = vrot.lane.b32.xlu2 %v1463_v41, %s2832_s4  ;;  %v1322_v15 = vadd.f32 %v1321_v10, %v1215_v8  ;;  %v1346_v37 = vadd.f32 %v1342_v61, %v1316_v30 }
 0xd99   :  { %v1459_v43 = vsel %vm1362_vm10, %v1458_v60, %v1417_v55  ;;  %v1488_v55 = vrot.slane %v1348_v34, 4 }
 0xd9a   :  { %1614 = vrot.lane.b32.xlu0 %v1459_v43, %s2832_s4  ;;  %v1350_v33 = vadd.f32 %v1342_v61, %v1322_v15  ;;  %v1476_v5 = vrot.slane %v1346_v37, 4 }
 0xd9c   :  { %v1477_v53 = vsel %vm1362_vm10, %v1350_v33, %v1476_v5 }
 0xd9d   :  { %v1485_v6 = vperm.slane %v1477_v53, %v3254_v42 }
 0xd9e   :  { %v1227_v17 = vpop.f32.mrf.mxu1 }
 0xd9f   :  { %v1324_v57 = vpop.f32.mrf.mxu3 }
 0xda0   :  { %1749 = vrot.lane.b32.xlu1 %v1469_v50, %s2832_s4  ;;  %1695 = vrot.lane.b32.xlu2 %v1465_v51, %s2832_s4  ;;  %v1325_v9 = vadd.f32 %v1324_v57, %v1218_v54 }
 0xda2   :  { %1641 = vrot.lane.b32.xlu0 %v1461_v63, %s2832_s4  ;;  %v1352_v31 = vadd.f32 %v1342_v61, %v1325_v9 }
 0xda4   :  { %v1486_v38 = vrot.slane %v1352_v31, 4 }
 0xda6   :  { %v1487_v45 = vsel %vm1362_vm10, %v1486_v38, %v1348_v34 }
 0xda7   :  { %v1327_v19 = vpop.f32.mrf.mxu3  ;;  %v1493_v12 = vperm.slane %v1487_v45, %v3254_v42 }
 0xda8   :  { %1803 = vrot.lane.b32.xlu1 %v1473_v2, %s2832_s4  ;;  %v1328_v26 = vadd.f32 %v1327_v19, %v1221_v18 }
 0xda9   :  { %v1522_v8 = vrot.slane %v1493_v12, 4 }
 0xdaa   :  { %1776 = vrot.lane.b32.xlu0 %v1471_v3, %s2832_s4  ;;  %v1354_v36 = vadd.f32 %v1342_v61, %v1328_v26 }
 0xdac   :  { %v1500_v60 = vrot.slane %v1354_v36, 4 }
 0xdaf   :  { %v1330_v24 = vpop.f32.mrf.mxu3 }
 0xdb0   :  { %v1331_v28 = vadd.f32 %v1330_v24, %v1224_v22 }
 0xdb2   :  { %v1356_v56 = vadd.f32 %v1342_v61, %v1331_v28 }
 0xdb7   :  { %v1333_v20 = vpop.f32.mrf.mxu3 }
 0xdb8   :  { %v1334_v29 = vadd.f32 %v1333_v20, %v1227_v17 }
 0xdba   :  { %v1358_v32 = vadd.f32 %v1342_v61, %v1334_v29 }
 0xdbc   :  { %v1498_v39 = vrot.slane %v1358_v32, 4 }
 0xdbe   :  { %v1499_v46 = vsel %vm1362_vm10, %v1498_v39, %v1354_v36 }
 0xdbf   :  { %v1336_v35 = vpop.f32.mrf.mxu3  ;;  %v1505_v48 = vperm.slane %v1499_v46, %v3254_v42 }
 0xdc1   :  { %v1548_v10 = vrot.slane %v1505_v48, 4 }
 0xdf2   :  { %v1669_v14 = vpop.permute.xlu2 %1668 }
 0xdfa   :  { %v1696_v58 = vpop.permute.xlu2 %1695 }
 0xe0a   :  { %v1723_v11 = vpop.permute.xlu1 %1722 }
 0xe0b   :  { %2458 = vmatpush.xpose.msk.msrb.mxu2 %vm288_vm9, %v1723_v11 }
 0xe0c   :  { %v1615_v16 = vpop.permute.xlu0 %1614 }
 0xe0d   :  { %2450 = vmatpush.xpose.msk.msra.mxu0 %vm288_vm9, %v1615_v16 }
 0xe0e   :  { %2459 = vmatmul.msk.f32.vlgmr.msrb.gmra.mxu2 %vm288_vm9, %v1467_v40  ;;  %v1474_v40 = vrot.slane %v1350_v33, 4 }
 0xe10   :  { %2451 = vmatmul.msk.f32.vlgmr.msra.gmra.mxu0 %vm288_vm9, %v1459_v43  ;;  %v1512_v43 = vrot.slane %v1356_v56, 4  ;;  %v1475_v49 = vsel %vm1362_vm10, %v1474_v40, %v1346_v37 }
 0xe11   :  { %2454 = vmatpush.xpose.msk.msrb.mxu0 %vm288_vm9, %v1669_v14 }
 0xe12   :  { %v1750_v13 = vpop.permute.xlu1 %1749 }
 0xe13   :  { %2460 = vmatpush.xpose.msk.msra.mxu3 %vm288_vm9, %v1750_v13 }
 0xe14   :  { %v1642_v27 = vpop.permute.xlu0 %1641 }
 0xe15   :  { %2452 = vmatpush.xpose.msk.msra.mxu1 %vm288_vm9, %v1642_v27 }
 0xe16   :  { %2461 = vmatmul.msk.f32.vlgmr.msra.gmra.mxu3 %vm288_vm9, %v1469_v50  ;;  %v1489_v50 = vsel %vm1362_vm10, %v1352_v31, %v1488_v55 }
 0xe17   :  { %v1497_v7 = vperm.slane %v1489_v50, %v3254_v42 }
 0xe18   :  { %2453 = vmatmul.msk.f32.vlgmr.msra.gmra.mxu1 %vm288_vm9, %v1461_v63  ;;  %2455 = vmatmul.msk.f32.vlgmr.msrb.gmra.mxu0 %vm288_vm9, %v1463_v41  ;;  %v1230_v41 = vpop.f32.mrf.mxu1 }
 0xe19   :  { %2456 = vmatpush.xpose.msk.msrb.mxu1 %vm288_vm9, %v1696_v58  ;;  %v1337_v44 = vadd.f32 %v1336_v35, %v1230_v41  ;;  %v1534_v54 = vrot.slane %v1497_v7, 4  ;;  %v1536_v58 = vrot.slane %v1485_v6, 4 }
 0xe1a   :  { %v1804_v52 = vpop.permute.xlu1 %1803 }
 0xe1b   :  { %v1360_v47 = vadd.f32 %v1342_v61, %v1337_v44  ;;  %v1535_v61 = vsel %vm1362_vm10, %v1534_v54, %v1485_v6  ;;  %v1537_v30 = vsel %vm1362_vm10, %v1497_v7, %v1536_v58 }
 0xe1c   :  { %v1777_v21 = vpop.permute.xlu0 %1776  ;;  %v1541_v28 = vperm.slane %v1535_v61, %v3277_v23  ;;  %v1545_v36 = vperm.slane %v1537_v30, %v3277_v23 }
 0xe1d   :  { %2464 = vmatpush.xpose.msk.msra.mxu1 %vm288_vm9, %v1804_v52  ;;  %2462 = vmatpush.xpose.msk.msra.mxu0 %vm288_vm9, %v1777_v21  ;;  %v1510_v0 = vrot.slane %v1360_v47, 4  ;;  %v1513_v63 = vsel %vm1362_vm10, %v1360_v47, %v1512_v43 }
 0xe1e   :  { %v1521_v1 = vperm.slane %v1513_v63, %v3254_v42  ;;  %v1580_v37 = vrot.slane %v1541_v28, 4  ;;  %v1584_v40 = vrot.slane %v1545_v36, 4 }
 0xe20   :  { %2457 = vmatmul.msk.f32.vlgmr.msrb.gmra.mxu1 %vm288_vm9, %v1465_v51  ;;  %2463 = vmatmul.msk.f32.vlgmr.msra.gmra.mxu0 %vm288_vm9, %v1471_v3  ;;  %v1501_v51 = vsel %vm1362_vm10, %v1358_v32, %v1500_v60  ;;  %v1481_v3 = vperm.slane %v1475_v49, %v3254_v42  ;;  %v1558_v14 = vrot.slane %v1521_v1, 4 }
 0xe21   :  { %v1509_v4 = vperm.slane %v1501_v51, %v3254_v42 }
 0xe22   :  { %v1524_v16 = vrot.slane %v1481_v3, 4  ;;  %v1523_v18 = vsel %vm1362_vm10, %v1522_v8, %v1481_v3 }
 0xe23   :  { %v1560_v57 = vrot.slane %v1509_v4, 4  ;;  %v1559_v52 = vsel %vm1362_vm10, %v1558_v14, %v1509_v4 }
 0xe24   :  { %v1565_v24 = vperm.slane %v1559_v52, %v3277_v23  ;;  %v1525_v9 = vsel %vm1362_vm10, %v1493_v12, %v1524_v16 }
 0xe25   :  { %v1561_v15 = vsel %vm1362_vm10, %v1521_v1, %v1560_v57  ;;  %v1533_v62 = vperm.slane %v1525_v9, %v3277_v23 }
 0xe26   :  { %v1578_v29 = vrot.slane %v1565_v24, 4  ;;  %v1569_v31 = vperm.slane %v1561_v15, %v3277_v23  ;;  %v1581_v41 = vsel %vm1362_vm10, %v1565_v24, %v1580_v37 }
 0xe27   :  { %v1576_v34 = vrot.slane %v1533_v62, 4 }
 0xe28   :  { %2465 = vmatmul.msk.f32.vlgmr.msra.gmra.mxu1 %vm288_vm9, %v1473_v2  ;;  %v1511_v2 = vsel %vm1362_vm10, %v1510_v0, %v1356_v56  ;;  %v1579_v56 = vsel %vm1362_vm10, %v1578_v29, %v1541_v28  ;;  %v1582_v38 = vrot.slane %v1569_v31, 4  ;;  %v1585_v55 = vsel %vm1362_vm10, %v1569_v31, %v1584_v40 }
 0xe29   :  { %v1517_v59 = vperm.slane %v1511_v2, %v3254_v42  ;;  %v1529_v42 = vperm.slane %v1523_v18, %v3277_v23 }
 0xe2a   :  { %v1583_v35 = vsel %vm1362_vm10, %v1582_v38, %v1545_v36 }
 0xe2b   :  { %v1546_v11 = vrot.slane %v1517_v59, 4  ;;  %v1549_v19 = vsel %vm1362_vm10, %v1517_v59, %v1548_v10  ;;  %v1572_v20 = vrot.slane %v1529_v42, 4 }
 0xe2c   :  { %v1557_v22 = vperm.slane %v1549_v19, %v3277_v23 }
 0xe2d   :  { %v1547_v13 = vsel %vm1362_vm10, %v1546_v11, %v1505_v48 }
 0xe2e   :  { %v1553_v27 = vperm.slane %v1547_v13, %v3277_v23  ;;  %v1574_v26 = vrot.slane %v1557_v22, 4  ;;  %v1577_v39 = vsel %vm1362_vm10, %v1557_v22, %v1576_v34  ;;  %v1586_v23 = vld [vmem:[#allocation8] sm:$0xff] }
 0xe2f   :  { %2180 = vmatpush.msrb.mxu1 %v1577_v39  ;;  %vm1587_vm0 = vcmp.gt.f32.partialorder %v1586_v23, 0.5 }
 0xe30   :  { %v1570_v21 = vrot.slane %v1553_v27, 4  ;;  %v1573_v32 = vsel %vm1362_vm10, %v1553_v27, %v1572_v20  ;;  %v1575_v33 = vsel %vm1362_vm10, %v1574_v26, %v1533_v62  ;;  %v1588_v60 = vsel %vm1587_vm0, -1e+30, %v2831_v25 }
 0xe31   :  { %2134 = vmatpush.msrb.mxu3 %v1573_v32  ;;  %2157 = vmatpush.msrb.mxu0 %v1575_v33  ;;  %v1597_v43 = vperm.slane %v1588_v60, 0  ;;  %v1593_v44 = vrot.slane %v1588_v60, 4  ;;  %v1590_v46 = vrot.slane %v1588_v60, 1  ;;  %v1591_v47 = vrot.slane %v1588_v60, 2 }
 0xe32   :  { %v1571_v17 = vsel %vm1362_vm10, %v1570_v21, %v1529_v42  ;;  %2272 = vmatpush.msra.mxu1 %v1585_v55  ;;  %v1594_v1 = vrot.slane %v1588_v60, 5  ;;  %v1592_v3 = vrot.slane %v1588_v60, 3  ;;  %v1595_v7 = vrot.slane %v1588_v60, 6 }
 0xe33   :  { %2111 = vmatpush.msra.mxu2 %v1571_v17  ;;  %2226 = vmatpush.msra.mxu3 %v1581_v41  ;;  %v1601_v49 = vperm.slane %v1593_v44, 0  ;;  %v1598_v0 = vperm.slane %v1590_v46, 0  ;;  %v1599_v63 = vperm.slane %v1591_v47, 0  ;;  %v1596_v58 = vrot.slane %v1588_v60, 7 }
 0xe34   :  { %2249 = vmatpush.msra.mxu0 %v1583_v35  ;;  %v1602_v8 = vperm.slane %v1594_v1, 0  ;;  %v1600_v11 = vperm.slane %v1592_v3, 0  ;;  %v1603_v14 = vperm.slane %v1595_v7, 0 }
 0xe35   :  { %2203 = vmatpush.msrb.mxu2 %v1579_v56  ;;  %v1604_v42 = vperm.slane %v1596_v58, 0 }
 0xe8d   :  { %v1637_v5 = vpop.f32.mrf.mxu0 }
 0xe8e   :  { %v1638_v45 = vadd.f32 %v1637_v5, %v1597_v43 }
 0xe90   :  { %v1830_v50 = vsel %vm1829_vm11, %v1638_v45, -inf }
 0xe91   :  { %v1745_v51 = vpop.f32.mrf.mxu2  ;;  %1831 = vmax.xlane.f32.xlu2 %v1830_v50 }
 0xe92   :  { %v1746_v53 = vadd.f32 %v1745_v51, %v1601_v49 }
 0xe94   :  { %v1842_v59 = vsel %vm1829_vm11, %v1746_v53, -inf }
 0xe95   :  { %v1664_v12 = vpop.f32.mrf.mxu1  ;;  %v1691_v48 = vpop.f32.mrf.mxu0 }
 0xe96   :  { %v1665_v2 = vadd.f32 %v1664_v12, %v1598_v0  ;;  %v1692_v25 = vadd.f32 %v1691_v48, %v1599_v63 }
 0xe98   :  { %v1836_v4 = vsel %vm1829_vm11, %v1692_v25, -inf  ;;  %v1833_v6 = vsel %vm1829_vm11, %v1665_v2, -inf }
 0xe99   :  { %1837 = vmax.xlane.f32.xlu1 %v1836_v4  ;;  %1843 = vmax.xlane.f32.xlu2 %v1842_v59  ;;  %v1772_v10 = vpop.f32.mrf.mxu3 }
 0xe9a   :  { %1834 = vmax.xlane.f32.xlu0 %v1833_v6  ;;  %v1773_v16 = vadd.f32 %v1772_v10, %v1602_v8 }
 0xe9c   :  { %v1845_v52 = vsel %vm1829_vm11, %v1773_v16, -inf }
 0xe9d   :  { %v1718_v54 = vpop.f32.mrf.mxu1  ;;  %v1799_v57 = vpop.f32.mrf.mxu0 }
 0xe9e   :  { %v1719_v13 = vadd.f32 %v1718_v54, %v1600_v11  ;;  %v1800_v27 = vadd.f32 %v1799_v57, %v1603_v14 }
 0xea0   :  { %v1839_v18 = vsel %vm1829_vm11, %v1719_v13, -inf  ;;  %v1848_v19 = vsel %vm1829_vm11, %v1800_v27, -inf }
 0xea1   :  { %1840 = vmax.xlane.f32.xlu2 %v1839_v18  ;;  %1849 = vmax.xlane.f32.xlu1 %v1848_v19 }
 0xea2   :  { %1846 = vmax.xlane.f32.xlu0 %v1845_v52 }
 0xea5   :  { %v1826_v21 = vpop.f32.mrf.mxu1 }
 0xea6   :  { %v1827_v22 = vadd.f32 %v1826_v21, %v1604_v42 }
 0xea8   :  { %v1851_v24 = vsel %vm1829_vm11, %v1827_v22, -inf }
 0xea9   :  { %1852 = vmax.xlane.f32.xlu2 %v1851_v24 }
 0xf04   :  { %v1832_v9 = vpop.xlane.xlu2 %1831 }
 0xf05   :  { %v1854_v61 = vsub.f32 %v1638_v45, %v1832_v9 }
 0xf07   :  { %v1862_v15 = vmul.f32 1.442695, %v1854_v61 }
 0xf09   :  { %2601 = vpow2.f32 %v1862_v15 }
 0xf0c   :  { %v1838_v17 = vpop.xlane.xlu1 %1837  ;;  %v1844_v20 = vpop.xlane.xlu2 %1843 }
 0xf0d   :  { %v1856_v62 = vsub.f32 %v1692_v25, %v1838_v17  ;;  %v1858_v26 = vsub.f32 %v1746_v53, %v1844_v20  ;;  %v1835_v28 = vpop.xlane.xlu0 %1834  ;;  %v2836_v25 = vmov 8.0  }
 0xf0e   :  { %v1855_v29 = vsub.f32 %v1665_v2, %v1835_v28 }
 0xf0f   :  { %v3396_v30 = vpop.eup %2601  ;;  %v1866_v31 = vmul.f32 1.442695, %v1856_v62  ;;  %v1870_v32 = vmul.f32 1.442695, %v1858_v26 }
 0xf10   :  { %v1864_v33 = vmul.f32 1.442695, %v1855_v29  ;;  %v1878_v34 = vsel %vm1829_vm11, %v3396_v30, 0.0 }
 0xf11   :  { %2603 = vpow2.f32 %v1866_v31  ;;  %1879 = vadd.xlane.f32.xlu0 %v1878_v34 }
 0xf12   :  { %2605 = vpow2.f32 %v1870_v32 }
 0xf13   :  { %2607 = vpow2.f32 %v1864_v33 }
 0xf14   :  { %v1841_v36 = vpop.xlane.xlu2 %1840  ;;  %v1850_v56 = vpop.xlane.xlu1 %1849 }
 0xf15   :  { %v1857_v37 = vsub.f32 %v1719_v13, %v1841_v36  ;;  %v1860_v38 = vsub.f32 %v1800_v27, %v1850_v56  ;;  %v1847_v39 = vpop.xlane.xlu0 %1846 }
 0xf16   :  { %v1859_v40 = vsub.f32 %v1773_v16, %v1847_v39 }
 0xf17   :  { %v3400_v41 = vpop.eup %2603  ;;  %v1868_v35 = vmul.f32 1.442695, %v1857_v37  ;;  %v1874_v55 = vmul.f32 1.442695, %v1860_v38 }
 0xf18   :  { %v3402_v23 = vpop.eup %2605  ;;  %v1872_v60 = vmul.f32 1.442695, %v1859_v40  ;;  %v1884_v43 = vsel %vm1829_vm11, %v3400_v41, 0.0 }
 0xf19   :  { %v3406_v44 = vpop.eup %2607  ;;  %2609 = vpow2.f32 %v1868_v35  ;;  %1885 = vadd.xlane.f32.xlu2 %v1884_v43  ;;  %v1890_v5 = vsel %vm1829_vm11, %v3402_v23, 0.0 }
 0xf1a   :  { %2611 = vpow2.f32 %v1874_v55  ;;  %1891 = vadd.xlane.f32.xlu0 %v1890_v5  ;;  %v1881_v45 = vsel %vm1829_vm11, %v3406_v44, 0.0 }
 0xf1b   :  { %2613 = vpow2.f32 %v1872_v60  ;;  %1882 = vadd.xlane.f32.xlu1 %v1881_v45 }
 0xf1c   :  { %v1853_v46 = vpop.xlane.xlu2 %1852 }
 0xf1d   :  { %v1861_v47 = vsub.f32 %v1827_v22, %v1853_v46 }
 0xf1f   :  { %v3412_v49 = vpop.eup %2609  ;;  %v1876_v50 = vmul.f32 1.442695, %v1861_v47 }
 0xf20   :  { %v3414_v51 = vpop.eup %2611  ;;  %v1887_v0 = vsel %vm1829_vm11, %v3412_v49, 0.0 }
 0xf21   :  { %v3418_v63 = vpop.eup %2613  ;;  %2615 = vpow2.f32 %v1876_v50  ;;  %v1896_v53 = vsel %vm1829_vm11, %v3414_v51, 0.0 }
 0xf22   :  { %1897 = vadd.xlane.f32.xlu0 %v1896_v53  ;;  %v1893_v12 = vsel %vm1829_vm11, %v3418_v63, 0.0 }
 0xf23   :  { %1888 = vadd.xlane.f32.xlu1 %v1887_v0  ;;  %1894 = vadd.xlane.f32.xlu2 %v1893_v12 }
 0xf27   :  { %v3424_v48 = vpop.eup %2615 }
 0xf28   :  { %v1899_v1 = vsel %vm1829_vm11, %v3424_v48, 0.0 }
 0xf2b   :  { %1900 = vadd.xlane.f32.xlu1 %v1899_v1 }
 0xf84   :  { %v1880_v2 = vpop.xlane.xlu0 %1879 }
 0xf85   :  { %2617 = vrcp.f32 %v1880_v2  ;;  %v1911_v8 = vand.u32 2147483647, %v1880_v2  ;;  %v1913_v11 = vand.u32 2147483648, %v1880_v2  ;;  %vm1907_vm13 = vweird.f32 %v1880_v2 }
 0xf86   :  { %2619 = vrcp.f32 %v2836_v25 }
 0xf87   :  { %vm3437_vm14 = vcmp.eq.f32.partialorder %v1911_v8, 8.507059e+37  ;;  %v1914_v42 = vor.u32 1.1754944e-38, %v1913_v11 }
 0xf8b   :  { %v2618_v3 = vpop.eup %2617 }
 0xf8c   :  { %v1903_v7 = vmul.f32 %v2618_v3, %v1880_v2  ;;  %v1886_v4 = vpop.xlane.xlu2 %1885  ;;  %v3434_v14 = vpop.eup %2619  ;;  %vm1908_vm12 = vweird.f32 %v2618_v3 }
 0xf8d   :  { %2621 = vrcp.f32 %v1886_v4  ;;  %v3428_v59 = vpop.xlane.xlu0 %1891  ;;  %v1941_v54 = vand.u32 2147483647, %v1886_v4  ;;  %v1943_v57 = vand.u32 2147483648, %v1886_v4  ;;  %vm1909_vm15 = vmor %vm1907_vm13, %vm1908_vm12  ;;  %vm1937_vm1 = vweird.f32 %v1886_v4 }
 0xf8e   :  { %v1904_v6 = vsub.f32 1.0, %v1903_v7  ;;  %v3430_v10 = vpop.xlane.xlu1 %1882  ;;  %2623 = vrcp.f32 %v3428_v59  ;;  %v1971_v13 = vand.u32 2147483647, %v3428_v59  ;;  %vm1967_vm2 = vweird.f32 %v3428_v59 }
 0xf8f   :  { %2625 = vrcp.f32 %v3430_v10  ;;  %v1926_v18 = vand.u32 2147483647, %v3430_v10  ;;  %v1928_v19 = vand.u32 2147483648, %v3430_v10  ;;  %v2079_v21 = vmul.f32 8.0, %v3434_v14 }
 0xf90   :  { %v1905_v16 = vmul.f32 %v2618_v3, %v1904_v6  ;;  %vm3445_vm3 = vcmp.eq.f32.partialorder %v1941_v54, 8.507059e+37  ;;  %v1944_v15 = vor.u32 1.1754944e-38, %v1943_v57  ;;  %vm1922_vm4 = vweird.f32 %v3430_v10 }
 0xf91   :  { %vm3453_vm5 = vcmp.eq.f32.partialorder %v1971_v13, 8.507059e+37  ;;  %v1973_v28 = vand.u32 2147483648, %v3428_v59  ;;  %vm3460_vm6 = vcmp.eq.f32.partialorder %v1926_v18, 8.507059e+37  ;;  %v1929_v34 = vor.u32 1.1754944e-38, %v1928_v19 }
 0xf92   :  { %v1906_v27 = vadd.f32 %v2618_v3, %v1905_v16  ;;  %v2080_v38 = vsub.f32 1.0, %v2079_v21 }
 0xf93   :  { %v2622_v52 = vpop.eup %2621  ;;  %v1974_v0 = vor.u32 1.1754944e-38, %v1973_v28 }
 0xf94   :  { %v2624_v22 = vpop.eup %2623  ;;  %v1910_v24 = vsel %vm1909_vm15, %v2618_v3, %v1906_v27  ;;  %v1933_v9 = vmul.f32 %v2622_v52, %v1886_v4  ;;  %vm1938_vm7 = vweird.f32 %v2622_v52  ;;  %v3480_v53 = vmul.f32 %v3434_v14, %v2080_v38 }
 0xf95   :  { %v2626_v17 = vpop.eup %2625  ;;  %v1915_v20 = vsel %vm3437_vm14, %v1914_v42, %v1910_v24  ;;  %v1963_v62 = vmul.f32 %v2624_v22, %v3428_v59  ;;  %vm1968_vm8 = vweird.f32 %v2624_v22  ;;  %v3472_v43 = vpop.xlane.xlu0 %1897  ;;  %vm1939_vm0 = vmor %vm1937_vm1, %vm1938_vm7 }
 0xf96   :  { %v1916_v29 = vmul.f32 %v3396_v30, %v1915_v20  ;;  %v1934_v31 = vsub.f32 1.0, %v1933_v9  ;;  %v1918_v32 = vmul.f32 %v2626_v17, %v3430_v10  ;;  %v3464_v36 = vpop.xlane.xlu1 %1888  ;;  %v3466_v56 = vpop.xlane.xlu2 %1894  ;;  %vm1923_vm10 = vweird.f32 %v2626_v17  ;;  %vm1969_vm12 = vmor %vm1967_vm2, %vm1968_vm8 }
 0xf97   :  { %v1964_v37 = vsub.f32 1.0, %v1963_v62  ;;  %2627 = vrcp.f32 %v3464_v36  ;;  %v1958_v60 = vand.u32 2147483648, %v3464_v36  ;;  %v1956_v46 = vand.u32 2147483647, %v3464_v36  ;;  %vm1924_vm14 = vmor %vm1922_vm4, %vm1923_vm10 }
 0xf98   :  { %v2022_v39 = vsel %vm1829_vm11, %v1916_v29, 0.0  ;;  %v1935_v30 = vmul.f32 %v2622_v52, %v1934_v31  ;;  %v1919_v40 = vsub.f32 1.0, %v1918_v32  ;;  %2629 = vrcp.f32 %v3466_v56 }
 0xf99   :  { %v2023_v35 = vrot.slane %v2022_v39, 4  ;;  %v1965_v55 = vmul.f32 %v2624_v22, %v1964_v37  ;;  %vm1952_vm13 = vweird.f32 %v3464_v36  ;;  %2631 = vrcp.f32 %v3472_v43 }
 0xf9a   :  { %v1936_v5 = vadd.f32 %v2622_v52, %v1935_v30  ;;  %v1920_v45 = vmul.f32 %v2626_v17, %v1919_v40  ;;  %v1959_v7 = vor.u32 1.1754944e-38, %v1958_v60  ;;  %v1986_v4 = vand.u32 2147483647, %v3466_v56 }
 0xf9b   :  { %v3475_v47 = vadd.f32 %v2023_v35, %v2022_v39  ;;  %v1966_v50 = vadd.f32 %v2624_v22, %v1965_v55  ;;  %vm3496_vm15 = vcmp.eq.f32.partialorder %v1956_v46, 8.507059e+37  ;;  %vm1982_vm1 = vweird.f32 %v3466_v56 }
 0xf9c   :  { %v1940_v12 = vsel %vm1939_vm0, %v2622_v52, %v1936_v5  ;;  %v1921_v1 = vadd.f32 %v2626_v17, %v1920_v45  ;;  %v1988_v13 = vand.u32 2147483648, %v3466_v56  ;;  %vm1997_vm4 = vweird.f32 %v3472_v43 }
 0xf9d   :  { %v2628_v2 = vpop.eup %2627  ;;  %v1945_v25 = vsel %vm3445_vm3, %v1944_v15, %v1940_v12  ;;  %v1970_v3 = vsel %vm1969_vm12, %v2624_v22, %v1966_v50  ;;  %v2025_v54 = vrot.slane %v3475_v47, 2  ;;  %vm3510_vm3 = vcmp.eq.f32.partialorder %v1986_v4, 8.507059e+37 }
 0xf9e   :  { %v1946_v6 = vmul.f32 %v3400_v41, %v1945_v25  ;;  %v1925_v8 = vsel %vm1924_vm14, %v2626_v17, %v1921_v1  ;;  %v1975_v59 = vsel %vm3453_vm5, %v1974_v0, %v1970_v3  ;;  %v1948_v11 = vmul.f32 %v2628_v2, %v3464_v36  ;;  %v2630_v10 = vpop.eup %2629  ;;  %v3519_v62 = vpop.xlane.xlu1 %1900 }
 0xf9f   :  { %v1930_v57 = vsel %vm3460_vm6, %v1929_v34, %v1925_v8  ;;  %v1976_v41 = vmul.f32 %v3402_v23, %v1975_v59  ;;  %v1978_v19 = vmul.f32 %v2630_v10, %v3466_v56  ;;  %vm1953_vm2 = vweird.f32 %v2628_v2  ;;  %v2632_v23 = vpop.eup %2631 }
 0xfa0   :  { %v2036_v27 = vsel %vm1829_vm11, %v1946_v6, 0.0  ;;  %v1931_v58 = vmul.f32 %v3406_v44, %v1930_v57  ;;  %v1949_v18 = vsub.f32 1.0, %v1948_v11  ;;  %vm2083_vm5 = vweird.f32 %v3434_v14  ;;  %vm1954_vm7 = vmor %vm1952_vm13, %vm1953_vm2 }
 0xfa1   :  { %v2037_v52 = vrot.slane %v2036_v27, 4  ;;  %v2050_v42 = vsel %vm1829_vm11, %v1976_v41, 0.0  ;;  %v1979_v9 = vsub.f32 1.0, %v1978_v19  ;;  %v1993_v17 = vmul.f32 %v2632_v23, %v3472_v43 }
 0xfa2   :  { %v2029_v22 = vsel %vm1829_vm11, %v1931_v58, 0.0  ;;  %v2051_v24 = vrot.slane %v2050_v42, 4  ;;  %v1950_v44 = vmul.f32 %v2628_v2, %v1949_v18  ;;  %v2001_v20 = vand.u32 2147483647, %v3472_v43 }
 0xfa3   :  { %v2038_v61 = vadd.f32 %v2037_v52, %v2036_v27  ;;  %v2030_v15 = vrot.slane %v2029_v22, 4  ;;  %v1980_v29 = vmul.f32 %v2630_v10, %v1979_v9  ;;  %vm1983_vm6 = vweird.f32 %v2630_v10 }
 0xfa4   :  { %v2052_v26 = vadd.f32 %v2051_v24, %v2050_v42  ;;  %v1951_v28 = vadd.f32 %v2628_v2, %v1950_v44  ;;  %v1989_v32 = vor.u32 1.1754944e-38, %v1988_v13  ;;  %v1994_v33 = vsub.f32 1.0, %v1993_v17  ;;  %vm1984_vm10 = vmor %vm1982_vm1, %vm1983_vm6 }
 0xfa5   :  { %v2031_v31 = vadd.f32 %v2030_v15, %v2029_v22  ;;  %v2003_v34 = vand.u32 2147483648, %v3472_v43  ;;  %v1981_v38 = vadd.f32 %v2630_v10, %v1980_v29  ;;  %vm1998_vm8 = vweird.f32 %v2632_v23 }
 0xfa6   :  { %v1955_v37 = vsel %vm1954_vm7, %v2628_v2, %v1951_v28  ;;  %2633 = vrcp.f32 %v3519_v62  ;;  %v2039_v39 = vrot.slane %v2038_v61, 2  ;;  %v1995_v40 = vmul.f32 %v2632_v23, %v1994_v33  ;;  %vm1999_vm12 = vmor %vm1997_vm4, %vm1998_vm8 }
 0xfa7   :  { %v1960_v30 = vsel %vm3496_vm15, %v1959_v7, %v1955_v37  ;;  %vm3530_vm0 = vcmp.eq.f32.partialorder %v2001_v20, 8.507059e+37  ;;  %v2032_v35 = vrot.slane %v2031_v31, 2  ;;  %v2053_v55 = vrot.slane %v2052_v26, 2 }
 0xfa8   :  { %v1961_v60 = vmul.f32 %v3412_v49, %v1960_v30  ;;  %v1985_v5 = vsel %vm1984_vm10, %v2630_v10, %v1981_v38  ;;  %v1996_v46 = vadd.f32 %v2632_v23, %v1995_v40  ;;  %v2004_v50 = vor.u32 1.1754944e-38, %v2003_v34 }
 0xfa9   :  { %v1990_v45 = vsel %vm3510_vm3, %v1989_v32, %v1985_v5  ;;  %v2026_v0 = vadd.f32 %v2025_v54, %v3475_v47  ;;  %v2016_v1 = vand.u32 2147483647, %v3519_v62  ;;  %v2082_v49 = vadd.f32 %v3434_v14, %v3480_v53 }
 0xfaa   :  { %v2043_v56 = vsel %vm1829_vm11, %v1961_v60, 0.0  ;;  %v1991_v12 = vmul.f32 %v3418_v63, %v1990_v45  ;;  %v2000_v25 = vsel %vm1999_vm12, %v2632_v23, %v1996_v46  ;;  %v2018_v3 = vand.u32 2147483648, %v3519_v62 }
 0xfab   :  { %v2044_v2 = vrot.slane %v2043_v56, 4  ;;  %v2027_v7 = vrot.slane %v2026_v0, 1  ;;  %v2005_v63 = vsel %vm3530_vm0, %v2004_v50, %v2000_v25  ;;  %v3553_v43 = vsel %vm2083_vm5, %v3434_v14, %v2082_v49  ;;  %v2281_v49 = vld [vmem:[#allocation14 + $0x20] sm:$0xff]  ;;  %v2279_v25 = vld [vmem:[#allocation14 + $0x10] sm:$0xff] }
 0xfac   :  { %v2634_v4 = vpop.eup %2633  ;;  %v2057_v47 = vsel %vm1829_vm11, %v1991_v12, 0.0  ;;  %v2033_v6 = vadd.f32 %v2032_v35, %v2031_v31  ;;  %v2006_v53 = vmul.f32 %v3414_v51, %v2005_v63  ;;  %v2040_v54 = vadd.f32 %v2039_v39, %v2038_v61  ;;  %v2283_v12 = vld [vmem:[#allocation14 + $0x30] sm:$0xff] }
 0xfad   :  { %v2045_v8 = vadd.f32 %v2044_v2, %v2043_v56  ;;  %v2058_v59 = vrot.slane %v2057_v47, 4  ;;  %v2008_v11 = vmul.f32 %v2634_v4, %v3519_v62  ;;  %vm2013_vm13 = vweird.f32 %v2634_v4  ;;  %v2284_v56 = vld [vmem:[#allocation14 + $0x38] sm:$0xff] }
 0xfae   :  { %v2028_v16 = vadd.f32 %v2027_v7, %v2026_v0  ;;  %v2034_v10 = vrot.slane %v2033_v6, 1  ;;  %v2064_v13 = vsel %vm1829_vm11, %v2006_v53, 0.0  ;;  %v2041_v19 = vrot.slane %v2040_v54, 1  ;;  %v2280_v2 = vld [vmem:[#allocation14 + $0x18] sm:$0xff]  ;;  %v2277_v7 = vld [vmem:[#allocation14] sm:$0xff] }
 0xfaf   :  { %v2046_v57 = vrot.slane %v2045_v8, 2  ;;  %v2059_v41 = vadd.f32 %v2058_v59, %v2057_v47  ;;  %v2009_v27 = vsub.f32 1.0, %v2008_v11  ;;  %v2065_v58 = vrot.slane %v2064_v13, 4 }
 0xfb0   :  { %v2085_v14 = vmul.f32 %v3553_v43, %v2028_v16  ;;  %v2035_v18 = vadd.f32 %v2034_v10, %v2033_v6  ;;  %v2054_v21 = vadd.f32 %v2053_v55, %v2052_v26  ;;  %vm2012_vm14 = vweird.f32 %v3519_v62 }
 0xfb1   :  { %v2060_v52 = vrot.slane %v2059_v41, 2  ;;  %v2010_v42 = vmul.f32 %v2634_v4, %v2009_v27  ;;  %v2047_v51 = vadd.f32 %v2046_v57, %v2045_v8  ;;  %v2066_v23 = vadd.f32 %v2065_v58, %v2064_v13  ;;  %vm2014_vm15 = vmor %vm2012_vm14, %vm2013_vm13 }
 0xfb2   :  { %2466 = vmatmul.msk.f32.vlgmr.msra.gmra.mxu2 %vm1829_vm11, %v2085_v14  ;;  %v2086_v22 = vmul.f32 %v3553_v43, %v2035_v18  ;;  %v2042_v24 = vadd.f32 %v2041_v19, %v2040_v54  ;;  %v2055_v61 = vrot.slane %v2054_v21, 1  ;;  %vm2017_vm1 = vcmp.eq.f32.partialorder %v2016_v1, 8.507059e+37  ;;  %v2282_v1 = vld [vmem:[#allocation14 + $0x28] sm:$0xff] }
 0xfb3   :  { %v2061_v44 = vadd.f32 %v2060_v52, %v2059_v41  ;;  %v2011_v9 = vadd.f32 %v2634_v4, %v2010_v42  ;;  %v2048_v15 = vrot.slane %v2047_v51, 1  ;;  %v2067_v17 = vrot.slane %v2066_v23, 2  ;;  %2328 = vmatpush.msra.mxu2 %v2284_v56 }
 0xfb4   :  { %v2019_v20 = vor.u32 1.1754944e-38, %v2018_v3  ;;  %2467 = vmatmul.msk.f32.vlgmr.msrb.gmra.mxu3 %vm1829_vm11, %v2086_v22  ;;  %v2087_v26 = vmul.f32 %v3553_v43, %v2042_v24  ;;  %v2056_v62 = vadd.f32 %v2055_v61, %v2054_v21  ;;  %v2278_v3 = vld [vmem:[#allocation14 + $0x8] sm:$0xff]  ;;  %vm2301_vm2 = vcmask 1042434   ;;  %v2600_v21 = vld [vmem:[%s3594_s8] ss:$0 sm:$0xff] }
 0xfb5   :  { %v2015_v28 = vsel %vm2014_vm15, %v2634_v4, %v2011_v9  ;;  %v2049_v29 = vadd.f32 %v2048_v15, %v2047_v51  ;;  %v2062_v31 = vrot.slane %v2061_v44, 1  ;;  %v2068_v32 = vadd.f32 %v2067_v17, %v2066_v23  ;;  %2329 = vmatpush.msra.mxu2 %v2283_v12 }
 0xfb6   :  { %v2020_v33 = vsel %vm2017_vm1, %v2019_v20, %v2015_v28  ;;  %2468 = vmatmul.msk.f32.vlgmr.msrb.gmra.mxu0 %vm1829_vm11, %v2087_v26  ;;  %v2089_v37 = vmul.f32 %v3553_v43, %v2056_v62  ;;  %vm2304_vm3 = vcmask 1043459   ;;  %vm2307_vm4 = vcmask 1044484  }
 0xfb7   :  { %v2021_v34 = vmul.f32 %v3424_v48, %v2020_v33  ;;  %v2088_v38 = vmul.f32 %v3553_v43, %v2049_v29  ;;  %v2063_v39 = vadd.f32 %v2062_v31, %v2061_v44  ;;  %v2069_v30 = vrot.slane %v2068_v32, 1  ;;  %2330 = vmatpush.msra.mxu2 %v2282_v1 }
 0xfb8   :  { %vm2310_vm5 = vcmask 1045509   ;;  %vm2313_vm6 = vcmask 1046534   ;;  %vm2316_vm7 = vcmask 1047559  }
 0xfb9   :  { %v2071_v40 = vsel %vm1829_vm11, %v2021_v34, 0.0  ;;  %2469 = vmatmul.msk.f32.vlgmr.msrb.gmra.mxu1 %vm1829_vm11, %v2088_v38  ;;  %v2090_v36 = vmul.f32 %v3553_v43, %v2063_v39  ;;  %v2070_v55 = vadd.f32 %v2069_v30, %v2068_v32  ;;  %2331 = vmatpush.msra.mxu2 %v2281_v49 }
 0xfba   :  { %v2072_v35 = vrot.slane %v2071_v40, 4  ;;  %2470 = vmatmul.msk.f32.vlgmr.msrb.gmra.mxu2 %vm1829_vm11, %v2089_v37 }
 0xfbb   :  { %v2091_v48 = vmul.f32 %v3553_v43, %v2070_v55  ;;  %2332 = vmatpush.msra.mxu2 %v2280_v2 }
 0xfbc   :  { %v2073_v60 = vadd.f32 %v2072_v35, %v2071_v40  ;;  %2471 = vmatmul.msk.f32.vlgmr.msra.gmra.mxu3 %vm1829_vm11, %v2090_v36 }
 0xfbd   :  { %2333 = vmatpush.msra.mxu2 %v2279_v25 }
 0xfbe   :  { %v2074_v5 = vrot.slane %v2073_v60, 2  ;;  %2472 = vmatmul.msk.f32.vlgmr.msra.gmra.mxu0 %vm1829_vm11, %v2091_v48 }
 0xfbf   :  { %2334 = vmatpush.msra.mxu2 %v2278_v3 }
 0xfc0   :  { %v2075_v45 = vadd.f32 %v2074_v5, %v2073_v60 }
 0xfc1   :  { %2335 = vmatpush.msra.mxu2 %v2277_v7 }
 0xfc2   :  { %v2076_v46 = vrot.slane %v2075_v45, 1 }
 0xfc4   :  { %v2077_v50 = vadd.f32 %v2076_v46, %v2075_v45 }
 0xfc6   :  { %v2092_v0 = vmul.f32 %v3553_v43, %v2077_v50 }
 0xfc8   :  { %2473 = vmatmul.msk.f32.vlgmr.msra.gmra.mxu1 %vm1829_vm11, %v2092_v0  ;;  %vm2298_vm11 = vcmask 1041409  }
0x1033   :  { %v2159_v47 = vpop.f32.mrf.mxu0 }
0x1034   :  { %v2300_v8 = vrot.slane %v2159_v47, 6 }
0x1035   :  { %v2113_v4 = vpop.f32.mrf.mxu2 }
0x1036   :  { %v2182_v43 = vpop.f32.mrf.mxu1 }
0x1037   :  { %v2136_v63 = vpop.f32.mrf.mxu3  ;;  %v2303_v53 = vrot.slane %v2182_v43, 5 }
0x1038   :  { %v2297_v6 = vrot.slane %v2136_v63, 7 }
0x103a   :  { %v2299_v59 = vsel %vm2298_vm11, %v2297_v6, %v2113_v4 }
0x103b   :  { %v2302_v11 = vsel %vm2301_vm2, %v2300_v8, %v2299_v59  ;;  %v2251_v41 = vpop.f32.mrf.mxu0 }
0x103c   :  { %v2305_v10 = vsel %vm2304_vm3, %v2303_v53, %v2302_v11  ;;  %v2312_v14 = vrot.slane %v2251_v41, 2 }
0x103d   :  { %v2205_v16 = vpop.f32.mrf.mxu2 }
0x103e   :  { %v2306_v54 = vrot.slane %v2205_v16, 4 }
0x103f   :  { %v2228_v57 = vpop.f32.mrf.mxu3 }
0x1040   :  { %v2309_v13 = vrot.slane %v2228_v57, 3  ;;  %v2308_v27 = vsel %vm2307_vm4, %v2306_v54, %v2305_v10 }
0x1042   :  { %v2311_v58 = vsel %vm2310_vm5, %v2309_v13, %v2308_v27 }
0x1043   :  { %v2314_v19 = vsel %vm2313_vm6, %v2312_v14, %v2311_v58 }
0x1045   :  { %v2274_v18 = vpop.f32.mrf.mxu1 }
0x1046   :  { %v2315_v52 = vrot.slane %v2274_v18, 1 }
0x1048   :  { %v2317_v42 = vsel %vm2316_vm7, %v2315_v52, %v2314_v19 }
0x1049   :  { %2474 = vmatmul.msk.f32.vlgmr.msra.gmra.mxu2 %vm288_vm9, %v2317_v42 }
0x10cc   :  { %v2337_v51 = vpop.f32.mrf.mxu2 }
0x10cd   :  { %v2338_v23 = vadd.f32 %v2600_v21, %v2337_v51 }
0x10cf   :  { %2340 = vst.msk [vmem:[#allocation16] sm:$0xff] %vm288_vm9, %v2338_v23 }
0x10d0   :  { %2351 = dma.vmem_to_hbm [thread:$0]  %s2347_s3, 128, %s2349_s30, [#allocation7]  }
0x10d1   :  { %2815 = dma.done.wait [#allocation7], 128  }
0x10d2   :  { %2816 = vsyncadd [#allocation7], 4294967168 }
0x10d3   :  { %2356 = vsyncpa [#allocation6], 1 }
0x10d4   :  { %2357 = vsyncpa [#allocation9], 1 }
0x10d5   :  { %2358 = vsyncpa [#allocation12], 1 }
0x10d6   :  { %2359 = vsyncpa [#allocation15], 1 }
0x10d7   :  { %2360 = vsyncpa [#allocation7], 1 }

</bundles_post_ra>
